<compile_context>
chip_gen: v7x
topology: tpu7x:2x2x1
jax: 0.10.0
libtpu: 0.0.40
codegen_flags: <defaults>
</compile_context>

<pallas_src>
import functools
import math

import jax
import jax.numpy as jnp
from jax.experimental import pallas as pl
from jax.experimental.pallas import tpu as pltpu

# Fits comfortably under v7x's 64 MiB physical VMEM and raises the 16/32 MiB
# scoped defaults on v5e/v6e.
_VMEM_LIMIT = 48 * 1024 * 1024


def _round_up(x, m):
    return (x + m - 1) // m * m


def _pick_tile_m(m):
    """Row tile: 256 at real scale, full (8-aligned) block for tiny M."""
    tm = 256 if m >= 256 else _round_up(m, 8)
    return tm, _round_up(m, tm)


def _pick_tile_n(n):
    """Lane tile: largest of 512/384/256/128 that divides the 128-padded N
    (ViT-Base dims 768 / 2304 / 3072 need no weight padding)."""
    n_pad = _round_up(n, 128)
    for cand in (512, 384, 256, 128):
        if n_pad % cand == 0:
            return cand, n_pad
    return n_pad, n_pad  # unreachable: n_pad is always a multiple of 128


def _erf(x):
    # Abramowitz & Stegun 7.1.26 rational approximation, |err| < 1.5e-7
    # (exact-GELU semantics to f32 precision using only VPU/EUP-friendly ops).
    a1, a2, a3, a4, a5 = (0.254829592, -0.284496736, 1.421413741,
                          -1.453152027, 1.061405429)
    p = 0.3275911
    ax = jnp.abs(x)
    t = 1.0 / (1.0 + p * ax)
    poly = ((((a5 * t + a4) * t + a3) * t + a2) * t + a1) * t
    y = 1.0 - poly * jnp.exp(-ax * ax)
    return jnp.where(x >= 0, y, -y)


# ----------------------------------------------------------------------------
# Fused LayerNorm + matmul + bias + (GELU) + (residual) kernel
# ----------------------------------------------------------------------------
def _linear_kernel(*refs, fuse_ln, fuse_res, activation, eps):
    x_ref, w_ref, b_ref = refs[0], refs[1], refs[2]
    idx = 3
    if fuse_ln:
        g_ref, beta_ref = refs[idx], refs[idx + 1]
        idx += 2
    if fuse_res:
        res_ref = refs[idx]
        idx += 1
    o_ref = refs[idx]

    x = x_ref[...]
    if fuse_ln:
        xf = x.astype(jnp.float32)
        mu = jnp.mean(xf, axis=-1, keepdims=True)
        var = jnp.mean(jnp.square(xf - mu), axis=-1, keepdims=True)
        xf = (xf - mu) * jax.lax.rsqrt(var + eps)
        x = xf * g_ref[...] + beta_ref[...]
    # bf16 operands on the MXU, f32 accumulation.
    acc = jnp.dot(x.astype(jnp.bfloat16), w_ref[...],
                  preferred_element_type=jnp.float32)
    acc = acc + b_ref[...]                       # (1, tn) broadcast
    if activation == "gelu":
        acc = 0.5 * acc * (1.0 + _erf(acc * 0.7071067811865476))
    if fuse_res:
        acc = acc + res_ref[...].astype(jnp.float32)
    o_ref[...] = acc.astype(o_ref.dtype)


def linear(x, w, b, *, ln_g=None, ln_b=None, residual=None, activation=None,
           out_dtype=None, eps=1e-6):
    """out = [residual +] act(LN?(x) @ w + b).

    x: (M, K) f32/bf16, w: (K, N) (cast to bf16), b: (N,),
    residual: (M, N) or None.  Tiled over (M, N); K kept whole (<=3072 for
    ViT-Base so LN / residual fusion stays trivial and VMEM stays bounded).
    """
    M, K = x.shape
    N = w.shape[1]
    out_dtype = out_dtype if out_dtype is not None else x.dtype
    w = w.astype(jnp.bfloat16)

    tm, m_pad = _pick_tile_m(M)
    tn, n_pad = _pick_tile_n(N)

    # TODO(synk): at real scale keep the residual stream pre-padded to avoid
    # the per-call jnp.pad copy (only ~13% extra rows when M % 256 != 0).
    if m_pad != M:
        x = jnp.pad(x, ((0, m_pad - M), (0, 0)))
    if n_pad != N:
        w = jnp.pad(w, ((0, 0), (0, n_pad - N)))
        b = jnp.pad(b, (0, n_pad - N))
    if residual is not None and (m_pad != M or n_pad != N):
        residual = jnp.pad(residual, ((0, m_pad - M), (0, n_pad - N)))

    args = [x, w, b.reshape(1, n_pad).astype(jnp.float32)]
    in_specs = [
        pl.BlockSpec((tm, K), lambda i, j: (i, 0)),
        pl.BlockSpec((K, tn), lambda i, j: (0, j)),
        pl.BlockSpec((1, tn), lambda i, j: (0, j)),
    ]
    if ln_g is not None:
        args += [ln_g.reshape(1, K).astype(jnp.float32),
                 ln_b.reshape(1, K).astype(jnp.float32)]
        in_specs += [pl.BlockSpec((1, K), lambda i, j: (0, 0)),
                     pl.BlockSpec((1, K), lambda i, j: (0, 0))]
    if residual is not None:
        args.append(residual)
        in_specs.append(pl.BlockSpec((tm, tn), lambda i, j: (i, j)))

    x_bytes = m_pad * K * jnp.dtype(x.dtype).itemsize
    res_bytes = (m_pad * n_pad * jnp.dtype(residual.dtype).itemsize
                 if residual is not None else 0)
    cost = pl.CostEstimate(
        flops=2 * m_pad * K * n_pad,
        transcendentals=m_pad * n_pad if activation == "gelu" else 0,
        bytes_accessed=x_bytes + K * n_pad * 2
        + m_pad * n_pad * jnp.dtype(out_dtype).itemsize + res_bytes)

    out = pl.pallas_call(
        functools.partial(_linear_kernel, fuse_ln=ln_g is not None,
                          fuse_res=residual is not None,
                          activation=activation, eps=eps),
        out_shape=jax.ShapeDtypeStruct((m_pad, n_pad), out_dtype),
        grid=(m_pad // tm, n_pad // tn),
        in_specs=in_specs,
        out_specs=pl.BlockSpec((tm, tn), lambda i, j: (i, j)),
        compiler_params=pltpu.CompilerParams(
            dimension_semantics=("parallel", "parallel"),
            vmem_limit_bytes=_VMEM_LIMIT),
        cost_estimate=cost,
    )(*args)

    if m_pad != M or n_pad != N:
        out = out[:M, :N]
    return out


# ----------------------------------------------------------------------------
# Multi-head attention: head-groups sliced straight from the qkv slab
# ----------------------------------------------------------------------------
def _attn_kernel(q_ref, k_ref, v_ref, o_ref, *, heads, dh, scale):
    qb = q_ref[0] * scale          # (S, heads*dh) bf16; fold 1/sqrt(dh) into q
    kb = k_ref[0]
    vb = v_ref[0]
    outs = []
    for h in range(heads):         # static loop over packed heads
        sl = slice(h * dh, (h + 1) * dh)
        q, k, v = qb[:, sl], kb[:, sl], vb[:, sl]
        s = jnp.dot(q, k.T, preferred_element_type=jnp.float32)     # (S, S)
        m = jnp.max(s, axis=-1, keepdims=True)
        p = jnp.exp(s - m)
        inv = pl.reciprocal(jnp.sum(p, axis=-1, keepdims=True), approx=True)
        p = (p * inv).astype(v.dtype)
        outs.append(jnp.dot(p, v, preferred_element_type=jnp.float32))
    # single 128-lane-wide (lane-dense) store of the whole head group
    o_ref[0] = jnp.concatenate(outs, axis=-1).astype(o_ref.dtype)


def multihead_attention(qkv, num_heads):
    """qkv: (B, S, 3D) with per-token layout [q(nh,dh) | k(nh,dh) | v(nh,dh)]
    (timm convention).  Returns (B, S, D) bf16, heads concatenated on lanes.
    One grid step per (batch, head-group); no transposes in or out."""
    B, S, three_d = qkv.shape
    D = three_d // 3
    dh = D // num_heads
    # Pack heads so each block is 128 lanes (ViT-Base: dh=64 -> 2 heads).
    hp = 1
    for cand in range(num_heads, 0, -1):
        if num_heads % cand == 0 and cand * dh <= 128:
            hp = cand
            break
    gw = hp * dh
    assert gw % 128 == 0, (
        "head-group lane width must be a multiple of 128 (got "
        f"{gw}); use dh in {{32, 64, 128, ...}} with enough heads")
    G = num_heads // hp
    scale = 1.0 / math.sqrt(dh)

    cost = pl.CostEstimate(
        flops=4 * B * num_heads * S * S * dh,
        transcendentals=B * num_heads * S * S,
        bytes_accessed=qkv.size * jnp.dtype(qkv.dtype).itemsize + B * S * D * 2)

    # TODO(synk): for long clips (S ~ 1500+) switch to a flash-style KV-tiled
    # online softmax instead of materializing the full (S, S) scores.
    return pl.pallas_call(
        functools.partial(_attn_kernel, heads=hp, dh=dh, scale=scale),
        out_shape=jax.ShapeDtypeStruct((B, S, D), jnp.bfloat16),
        grid=(B, G),
        in_specs=[
            pl.BlockSpec((1, S, gw), lambda b, g: (b, 0, g)),          # q
            pl.BlockSpec((1, S, gw), lambda b, g: (b, 0, G + g)),      # k
            pl.BlockSpec((1, S, gw), lambda b, g: (b, 0, 2 * G + g)),  # v
        ],
        out_specs=pl.BlockSpec((1, S, gw), lambda b, g: (b, 0, g)),
        compiler_params=pltpu.CompilerParams(
            dimension_semantics=("parallel", "parallel"),
            vmem_limit_bytes=_VMEM_LIMIT),
        cost_estimate=cost,
    )(qkv, qkv, qkv)


# ----------------------------------------------------------------------------
# Parameter init (deterministic, synthetic) and model forward
# ----------------------------------------------------------------------------
def init_params(key, cfg):
    D = cfg["embed_dim"]
    C = cfg["in_chans"]
    ps = cfg["patch_size"]
    depth = cfg["depth"]
    hidden = D * cfg["mlp_ratio"]
    nc = cfg["num_classes"]
    S = cfg["seq_len"]
    T = cfg["num_frames"]

    keys = jax.random.split(key, 8 + depth)

    def nrm(k, shp, dtype=jnp.float32):
        return (0.02 * jax.random.normal(k, shp)).astype(dtype)

    zeros = lambda *shp: jnp.zeros(shp, jnp.float32)
    ones = lambda *shp: jnp.ones(shp, jnp.float32)
    bf = jnp.bfloat16   # matmul weights stored in bf16 once (MXU operands)

    params = {
        "patch_w": nrm(keys[0], (C * ps * ps, D), bf), "patch_b": zeros(D),
        "cls_token": nrm(keys[1], (1, 1, D)),
        "prompt_token": nrm(keys[2], (1, 1, D)),      # the resPrompt token
        "pos_embed": nrm(keys[3], (1, S, D)),
        "time_embed": nrm(keys[4], (1, T, D)),
        "norm_g": ones(D), "norm_b": zeros(D),
        "head_w": nrm(keys[5], (D, nc)), "head_b": zeros(nc),
        "blocks": [],
    }
    for i in range(depth):
        bk = jax.random.split(keys[8 + i], 4)
        params["blocks"].append({
            "ln1_g": ones(D), "ln1_b": zeros(D),
            "qkv_w": nrm(bk[0], (D, 3 * D), bf), "qkv_b": zeros(3 * D),
            "proj_w": nrm(bk[1], (D, D), bf), "proj_b": zeros(D),
            "ln2_g": ones(D), "ln2_b": zeros(D),
            "fc1_w": nrm(bk[2], (D, hidden), bf), "fc1_b": zeros(hidden),
            "fc2_w": nrm(bk[3], (hidden, D), bf), "fc2_b": zeros(D),
        })
    return params


def vit_forward(params, x, cfg, return_tokens=False):
    """x: (B, C, T, H, W) float32 video clip.  Returns logits of the
    resPrompt token (default), mirroring the PyTorch module's forward."""
    B, C, T, Himg, Wimg = x.shape
    ps = cfg["patch_size"]
    D = cfg["embed_dim"]
    nh = cfg["num_heads"]
    Hp, Wp = Himg // ps, Wimg // ps
    P = Hp * Wp

    # --- patch embedding (conv16x16 stride16 == unfold + tiled matmul) -------
    xp = jnp.transpose(x, (0, 2, 1, 3, 4))                    # (B,T,C,H,W)
    xp = xp.reshape(B, T, C, Hp, ps, Wp, ps)
    xp = jnp.transpose(xp, (0, 1, 3, 5, 2, 4, 6))             # (B,T,Hp,Wp,C,ps,ps)
    xp = xp.reshape(B * T * P, C * ps * ps)
    tok = linear(xp, params["patch_w"], params["patch_b"])    # (B*T*P, D) f32

    # --- temporal embedding + token assembly ---------------------------------
    # TODO(synk): exact prompt/pos/time-embed composition of the (non-public)
    # resPromptVisionTransformer is approximated with the standard
    # joint-space-time recipe: time embed on patches, learned pos embed on all.
    tok = tok.reshape(B, T, P, D) + params["time_embed"][:, :, None, :]
    tok = tok.reshape(B, T * P, D)
    cls = jnp.broadcast_to(params["cls_token"], (B, 1, D))
    prm = jnp.broadcast_to(params["prompt_token"], (B, 1, D))
    seq = jnp.concatenate([prm, cls, tok], axis=1) + params["pos_embed"]
    S = seq.shape[1]
    seq2d = seq.reshape(B * S, D).astype(jnp.float32)         # f32 residual stream

    # --- transformer blocks (pre-norm, joint space-time attention) -----------
    # 5 Pallas calls per block: LN1+QKV, attention, proj(+residual),
    # LN2+fc1(+GELU), fc2(+residual).
    for blk in params["blocks"]:
        qkv = linear(seq2d, blk["qkv_w"], blk["qkv_b"],
                     ln_g=blk["ln1_g"], ln_b=blk["ln1_b"],
                     out_dtype=jnp.bfloat16)                  # (B*S, 3D) bf16
        attn = multihead_attention(qkv.reshape(B, S, 3 * D), nh)  # (B,S,D) bf16
        seq2d = linear(attn.reshape(B * S, D), blk["proj_w"], blk["proj_b"],
                       residual=seq2d, out_dtype=jnp.float32)
        h = linear(seq2d, blk["fc1_w"], blk["fc1_b"],
                   ln_g=blk["ln2_g"], ln_b=blk["ln2_b"],
                   activation="gelu", out_dtype=jnp.bfloat16)  # (B*S, hidden)
        seq2d = linear(h, blk["fc2_w"], blk["fc2_b"],
                       residual=seq2d, out_dtype=jnp.float32)

    # --- final norm + heads ---------------------------------------------------
    # Only the resPrompt token (0) and the cls token (1) are consumed, so the
    # final LayerNorm + classifier run on a (B, 2, D) slice in plain jnp
    # (too small to be worth a Pallas kernel / a 10-lane masked store).
    lead = seq2d.reshape(B, S, D)[:, :2, :]
    mu = jnp.mean(lead, axis=-1, keepdims=True)
    var = jnp.mean(jnp.square(lead - mu), axis=-1, keepdims=True)
    feats = (lead - mu) * jax.lax.rsqrt(var + 1e-6)
    feats = feats * params["norm_g"] + params["norm_b"]
    x_resPrompt_tok = feats[:, 0, :]                          # resPrompt token
    x_features = feats[:, 1, :]                               # cls-token features
    x_resPrompt = x_resPrompt_tok @ params["head_w"] + params["head_b"]
    if return_tokens:
        return x_resPrompt, x_features
    return x_resPrompt


# ----------------------------------------------------------------------------
if __name__ == "__main__":
    # Small, self-consistent config (real model: img 224, D 768, depth 12,
    # heads 12 -> dh 64, i.e. 2 heads per 128-lane attention group).
    cfg = dict(
        img_size=32, patch_size=16, in_chans=3, num_frames=2,
        embed_dim=128, depth=2, num_heads=4, mlp_ratio=4, num_classes=10,
    )
    P = (cfg["img_size"] // cfg["patch_size"]) ** 2
    cfg["seq_len"] = 2 + cfg["num_frames"] * P   # prompt + cls + T*P patches

    key = jax.random.PRNGKey(0)
    k_param, k_x = jax.random.split(key)
    params = init_params(k_param, cfg)

    B = 2
    x = jax.random.normal(
        k_x, (B, cfg["in_chans"], cfg["num_frames"], cfg["img_size"],
              cfg["img_size"]), dtype=jnp.float32)

    fwd = jax.jit(lambda p, v: vit_forward(p, v, cfg))
    logits = jax.block_until_ready(fwd(params, x))
    assert logits.shape == (B, cfg["num_classes"])
    assert bool(jnp.all(jnp.isfinite(logits)))
    print("KERNEL_OK")
</pallas_src>

<mosaic_0001>
module attributes {stable_mosaic.version = 11 : i64} {
  func.func @_linear_kernel(%arg0: i32, %arg1: i32, %arg2: memref<16x768xf32, #tpu.memory_space<vmem>>, %arg3: memref<768x128xbf16, #tpu.memory_space<vmem>>, %arg4: memref<1x128xf32, #tpu.memory_space<vmem>>, %arg5: memref<16x128xf32, #tpu.memory_space<vmem>>) attributes {dimension_semantics = [#tpu.dimension_semantics<parallel>, #tpu.dimension_semantics<parallel>], iteration_bounds = array<i64: 1, 1>, scalar_prefetch = 0 : i64, scratch_operands = 0 : i64, tpu.core_type = #tpu.core_type<tc>, window_params = [{transform_indices = @transform_0, window_bounds = array<i64: 16, 768>}, {transform_indices = @transform_1, window_bounds = array<i64: 768, 128>}, {transform_indices = @transform_2, window_bounds = array<i64: 1, 128>}, {transform_indices = @transform_3, window_bounds = array<i64: 16, 128>}]} {
    %c0 = arith.constant 0 : index
    %c0_0 = arith.constant 0 : index
    %0 = vector.load %arg2[%c0, %c0_0] : memref<16x768xf32, #tpu.memory_space<vmem>>, vector<16x768xf32>
    %1 = arith.truncf %0 : vector<16x768xf32> to vector<16x768xbf16>
    %c0_1 = arith.constant 0 : index
    %c0_2 = arith.constant 0 : index
    %2 = vector.load %arg3[%c0_1, %c0_2] : memref<768x128xbf16, #tpu.memory_space<vmem>>, vector<768x128xbf16>
    %cst = arith.constant dense<0.000000e+00> : vector<16x128xf32>
    %3 = tpu.matmul %1, %2, %cst {dimension_numbers = #tpu.dot_dimension_numbers<[1], [0], [0], [1], [0, 0, 1, 1], [], []>} : vector<16x768xbf16>, vector<768x128xbf16>, vector<16x128xf32> -> vector<16x128xf32>
    %c0_3 = arith.constant 0 : index
    %c0_4 = arith.constant 0 : index
    %4 = vector.load %arg4[%c0_3, %c0_4] : memref<1x128xf32, #tpu.memory_space<vmem>>, vector<1x128xf32>
    %5 = vector.broadcast %4 : vector<1x128xf32> to vector<16x128xf32>
    %6 = arith.addf %3, %5 : vector<16x128xf32>
    %c0_5 = arith.constant 0 : index
    %c0_6 = arith.constant 0 : index
    %7 = vector.load %arg5[%c0_5, %c0_6] : memref<16x128xf32, #tpu.memory_space<vmem>>, vector<16x128xf32>
    tpu.vector_store %arg5[%c0_5, %c0_6], %6 {strides = array<i32>} : memref<16x128xf32, #tpu.memory_space<vmem>>, vector<16x128xf32>,
    return
  }
  func.func @transform_0(%arg0: i32, %arg1: i32) -> (i32, i32) {
    %c0_i32 = arith.constant 0 : i32
    %c0_i32_0 = arith.constant 0 : i32
    return %arg0, %c0_i32 : i32, i32
  }
  func.func @transform_1(%arg0: i32, %arg1: i32) -> (i32, i32) {
    %c0_i32 = arith.constant 0 : i32
    %c0_i32_0 = arith.constant 0 : i32
    return %c0_i32, %arg1 : i32, i32
  }
  func.func @transform_2(%arg0: i32, %arg1: i32) -> (i32, i32) {
    %c0_i32 = arith.constant 0 : i32
    %c0_i32_0 = arith.constant 0 : i32
    return %c0_i32, %arg1 : i32, i32
  }
  func.func @transform_3(%arg0: i32, %arg1: i32) -> (i32, i32) {
    %c0_i32 = arith.constant 0 : i32
    return %arg0, %arg1 : i32, i32
  }
}

module attributes {stable_mosaic.version = 11 : i64} {
  func.func @_linear_kernel(%arg0: i32, %arg1: i32, %arg2: memref<24x128xf32, #tpu.memory_space<vmem>>, %arg3: memref<128x384xbf16, #tpu.memory_space<vmem>>, %arg4: memref<1x384xf32, #tpu.memory_space<vmem>>, %arg5: memref<1x128xf32, #tpu.memory_space<vmem>>, %arg6: memref<1x128xf32, #tpu.memory_space<vmem>>, %arg7: memref<24x384xbf16, #tpu.memory_space<vmem>>) attributes {dimension_semantics = [#tpu.dimension_semantics<parallel>, #tpu.dimension_semantics<parallel>], iteration_bounds = array<i64: 1, 1>, scalar_prefetch = 0 : i64, scratch_operands = 0 : i64, tpu.core_type = #tpu.core_type<tc>, window_params = [{transform_indices = @transform_0, window_bounds = array<i64: 24, 128>}, {transform_indices = @transform_1, window_bounds = array<i64: 128, 384>}, {transform_indices = @transform_2, window_bounds = array<i64: 1, 384>}, {pipeline_mode = #tpu.pipeline_mode<synchronous>, transform_indices = @transform_3, window_bounds = array<i64: 1, 128>}, {pipeline_mode = #tpu.pipeline_mode<synchronous>, transform_indices = @transform_4, window_bounds = array<i64: 1, 128>}, {transform_indices = @transform_5, window_bounds = array<i64: 24, 384>}]} {
    %c0 = arith.constant 0 : index
    %c0_0 = arith.constant 0 : index
    %0 = vector.load %arg2[%c0, %c0_0] : memref<24x128xf32, #tpu.memory_space<vmem>>, vector<24x128xf32>
    %cst = arith.constant dense<0.000000e+00> : vector<24xf32>
    %1 = vector.multi_reduction <add>, %0, %cst [1] : vector<24x128xf32> to vector<24xf32>
    %2 = vector.shape_cast %1 : vector<24xf32> to vector<24x1xf32>
    %cst_1 = arith.constant 1.280000e+02 : f32
    %3 = vector.broadcast %cst_1 : f32 to vector<24x1xf32>
    %4 = arith.divf %2, %3 : vector<24x1xf32>
    %5 = vector.broadcast %4 : vector<24x1xf32> to vector<24x128xf32>
    %6 = arith.subf %0, %5 : vector<24x128xf32>
    %7 = arith.mulf %6, %6 : vector<24x128xf32>
    %cst_2 = arith.constant dense<0.000000e+00> : vector<24xf32>
    %8 = vector.multi_reduction <add>, %7, %cst_2 [1] : vector<24x128xf32> to vector<24xf32>
    %9 = vector.shape_cast %8 : vector<24xf32> to vector<24x1xf32>
    %cst_3 = arith.constant 1.280000e+02 : f32
    %10 = vector.broadcast %cst_3 : f32 to vector<24x1xf32>
    %11 = arith.divf %9, %10 : vector<24x1xf32>
    %12 = vector.broadcast %4 : vector<24x1xf32> to vector<24x128xf32>
    %13 = arith.subf %0, %12 : vector<24x128xf32>
    %cst_4 = arith.constant 9.99999997E-7 : f32
    %14 = vector.broadcast %cst_4 : f32 to vector<24x1xf32>
    %15 = arith.addf %11, %14 : vector<24x1xf32>
    %16 = math.rsqrt %15 : vector<24x1xf32>
    %17 = vector.broadcast %16 : vector<24x1xf32> to vector<24x128xf32>
    %18 = arith.mulf %13, %17 : vector<24x128xf32>
    %c0_5 = arith.constant 0 : index
    %c0_6 = arith.constant 0 : index
    %19 = vector.load %arg5[%c0_5, %c0_6] : memref<1x128xf32, #tpu.memory_space<vmem>>, vector<1x128xf32>
    %20 = vector.broadcast %19 : vector<1x128xf32> to vector<24x128xf32>
    %21 = arith.mulf %18, %20 : vector<24x128xf32>
    %c0_7 = arith.constant 0 : index
    %c0_8 = arith.constant 0 : index
    %22 = vector.load %arg6[%c0_7, %c0_8] : memref<1x128xf32, #tpu.memory_space<vmem>>, vector<1x128xf32>
    %23 = vector.broadcast %22 : vector<1x128xf32> to vector<24x128xf32>
    %24 = arith.addf %21, %23 : vector<24x128xf32>
    %25 = arith.truncf %24 : vector<24x128xf32> to vector<24x128xbf16>
    %c0_9 = arith.constant 0 : index
    %c0_10 = arith.constant 0 : index
    %26 = vector.load %arg3[%c0_9, %c0_10] : memref<128x384xbf16, #tpu.memory_space<vmem>>, vector<128x384xbf16>
    %cst_11 = arith.constant dense<0.000000e+00> : vector<24x384xf32>
    %27 = tpu.matmul %25, %26, %cst_11 {dimension_numbers = #tpu.dot_dimension_numbers<[1], [0], [0], [1], [0, 0, 1, 1], [], []>} : vector<24x128xbf16>, vector<128x384xbf16>, vector<24x384xf32> -> vector<24x384xf32>
    %c0_12 = arith.constant 0 : index
    %c0_13 = arith.constant 0 : index
    %28 = vector.load %arg4[%c0_12, %c0_13] : memref<1x384xf32, #tpu.memory_space<vmem>>, vector<1x384xf32>
    %29 = vector.broadcast %28 : vector<1x384xf32> to vector<24x384xf32>
    %30 = arith.addf %27, %29 : vector<24x384xf32>
    %31 = arith.truncf %30 : vector<24x384xf32> to vector<24x384xbf16>
    %c0_14 = arith.constant 0 : index
    %c0_15 = arith.constant 0 : index
    %32 = vector.load %arg7[%c0_14, %c0_15] : memref<24x384xbf16, #tpu.memory_space<vmem>>, vector<24x384xbf16>
    tpu.vector_store %arg7[%c0_14, %c0_15], %31 {strides = array<i32>} : memref<24x384xbf16, #tpu.memory_space<vmem>>, vector<24x384xbf16>,
    return
  }
  func.func @transform_0(%arg0: i32, %arg1: i32) -> (i32, i32) {
    %c0_i32 = arith.constant 0 : i32
    %c0_i32_0 = arith.constant 0 : i32
    return %arg0, %c0_i32 : i32, i32
  }
  func.func @transform_1(%arg0: i32, %arg1: i32) -> (i32, i32) {
    %c0_i32 = arith.constant 0 : i32
    %c0_i32_0 = arith.constant 0 : i32
    return %c0_i32, %arg1 : i32, i32
  }
  func.func @transform_2(%arg0: i32, %arg1: i32) -> (i32, i32) {
    %c0_i32 = arith.constant 0 : i32
    %c0_i32_0 = arith.constant 0 : i32
    return %c0_i32, %arg1 : i32, i32
  }
  func.func @transform_3(%arg0: i32, %arg1: i32) -> (i32, i32) {
    %c0_i32 = arith.constant 0 : i32
    %c0_i32_0 = arith.constant 0 : i32
    %c0_i32_1 = arith.constant 0 : i32
    return %c0_i32, %c0_i32_0 : i32, i32
  }
  func.func @transform_4(%arg0: i32, %arg1: i32) -> (i32, i32) {
    %c0_i32 = arith.constant 0 : i32
    %c0_i32_0 = arith.constant 0 : i32
    %c0_i32_1 = arith.constant 0 : i32
    return %c0_i32, %c0_i32_0 : i32, i32
  }
  func.func @transform_5(%arg0: i32, %arg1: i32) -> (i32, i32) {
    %c0_i32 = arith.constant 0 : i32
    return %arg0, %arg1 : i32, i32
  }
}

module attributes {stable_mosaic.version = 11 : i64} {
  func.func @_linear_kernel(%arg0: i32, %arg1: i32, %arg2: memref<24x128xbf16, #tpu.memory_space<vmem>>, %arg3: memref<128x128xbf16, #tpu.memory_space<vmem>>, %arg4: memref<1x128xf32, #tpu.memory_space<vmem>>, %arg5: memref<24x128xf32, #tpu.memory_space<vmem>>, %arg6: memref<24x128xf32, #tpu.memory_space<vmem>>) attributes {dimension_semantics = [#tpu.dimension_semantics<parallel>, #tpu.dimension_semantics<parallel>], iteration_bounds = array<i64: 1, 1>, scalar_prefetch = 0 : i64, scratch_operands = 0 : i64, tpu.core_type = #tpu.core_type<tc>, window_params = [{transform_indices = @transform_0, window_bounds = array<i64: 24, 128>}, {transform_indices = @transform_1, window_bounds = array<i64: 128, 128>}, {transform_indices = @transform_2, window_bounds = array<i64: 1, 128>}, {transform_indices = @transform_3, window_bounds = array<i64: 24, 128>}, {transform_indices = @transform_4, window_bounds = array<i64: 24, 128>}]} {
    %c0 = arith.constant 0 : index
    %c0_0 = arith.constant 0 : index
    %0 = vector.load %arg2[%c0, %c0_0] : memref<24x128xbf16, #tpu.memory_space<vmem>>, vector<24x128xbf16>
    %c0_1 = arith.constant 0 : index
    %c0_2 = arith.constant 0 : index
    %1 = vector.load %arg3[%c0_1, %c0_2] : memref<128x128xbf16, #tpu.memory_space<vmem>>, vector<128x128xbf16>
    %cst = arith.constant dense<0.000000e+00> : vector<24x128xf32>
    %2 = tpu.matmul %0, %1, %cst {dimension_numbers = #tpu.dot_dimension_numbers<[1], [0], [0], [1], [0, 0, 1, 1], [], []>} : vector<24x128xbf16>, vector<128x128xbf16>, vector<24x128xf32> -> vector<24x128xf32>
    %c0_3 = arith.constant 0 : index
    %c0_4 = arith.constant 0 : index
    %3 = vector.load %arg4[%c0_3, %c0_4] : memref<1x128xf32, #tpu.memory_space<vmem>>, vector<1x128xf32>
    %4 = vector.broadcast %3 : vector<1x128xf32> to vector<24x128xf32>
    %5 = arith.addf %2, %4 : vector<24x128xf32>
    %c0_5 = arith.constant 0 : index
    %c0_6 = arith.constant 0 : index
    %6 = vector.load %arg5[%c0_5, %c0_6] : memref<24x128xf32, #tpu.memory_space<vmem>>, vector<24x128xf32>
    %7 = arith.addf %5, %6 : vector<24x128xf32>
    %c0_7 = arith.constant 0 : index
    %c0_8 = arith.constant 0 : index
    %8 = vector.load %arg6[%c0_7, %c0_8] : memref<24x128xf32, #tpu.memory_space<vmem>>, vector<24x128xf32>
    tpu.vector_store %arg6[%c0_7, %c0_8], %7 {strides = array<i32>} : memref<24x128xf32, #tpu.memory_space<vmem>>, vector<24x128xf32>,
    return
  }
  func.func @transform_0(%arg0: i32, %arg1: i32) -> (i32, i32) {
    %c0_i32 = arith.constant 0 : i32
    %c0_i32_0 = arith.constant 0 : i32
    return %arg0, %c0_i32 : i32, i32
  }
  func.func @transform_1(%arg0: i32, %arg1: i32) -> (i32, i32) {
    %c0_i32 = arith.constant 0 : i32
    %c0_i32_0 = arith.constant 0 : i32
    return %c0_i32, %arg1 : i32, i32
  }
  func.func @transform_2(%arg0: i32, %arg1: i32) -> (i32, i32) {
    %c0_i32 = arith.constant 0 : i32
    %c0_i32_0 = arith.constant 0 : i32
    return %c0_i32, %arg1 : i32, i32
  }
  func.func @transform_3(%arg0: i32, %arg1: i32) -> (i32, i32) {
    %c0_i32 = arith.constant 0 : i32
    return %arg0, %arg1 : i32, i32
  }
  func.func @transform_4(%arg0: i32, %arg1: i32) -> (i32, i32) {
    %c0_i32 = arith.constant 0 : i32
    return %arg0, %arg1 : i32, i32
  }
}

module attributes {stable_mosaic.version = 11 : i64} {
  func.func @_attn_kernel(%arg0: i32, %arg1: i32, %arg2: memref<1x10x128xbf16, #tpu.memory_space<vmem>>, %arg3: memref<1x10x128xbf16, #tpu.memory_space<vmem>>, %arg4: memref<1x10x128xbf16, #tpu.memory_space<vmem>>, %arg5: memref<1x10x128xbf16, #tpu.memory_space<vmem>>) attributes {dimension_semantics = [#tpu.dimension_semantics<parallel>, #tpu.dimension_semantics<parallel>], iteration_bounds = array<i64: 2, 1>, scalar_prefetch = 0 : i64, scratch_operands = 0 : i64, tpu.core_type = #tpu.core_type<tc>, window_params = [{transform_indices = @transform_0, window_bounds = array<i64: 1, 10, 128>}, {transform_indices = @transform_1, window_bounds = array<i64: 1, 10, 128>}, {transform_indices = @transform_2, window_bounds = array<i64: 1, 10, 128>}, {transform_indices = @transform_3, window_bounds = array<i64: 1, 10, 128>}]} {
    %c0 = arith.constant 0 : index
    %c0_0 = arith.constant 0 : index
    %c0_1 = arith.constant 0 : index
    %0 = vector.load %arg2[%c0, %c0_0, %c0_1] : memref<1x10x128xbf16, #tpu.memory_space<vmem>>, vector<1x10x128xbf16>
    %1 = vector.shape_cast %0 : vector<1x10x128xbf16> to vector<10x128xbf16>
    %cst = arith.constant 1.767580e-01 : bf16
    %2 = vector.broadcast %cst : bf16 to vector<10x128xbf16>
    %3 = arith.mulf %1, %2 : vector<10x128xbf16>
    %c0_2 = arith.constant 0 : index
    %c0_3 = arith.constant 0 : index
    %c0_4 = arith.constant 0 : index
    %4 = vector.load %arg3[%c0_2, %c0_3, %c0_4] : memref<1x10x128xbf16, #tpu.memory_space<vmem>>, vector<1x10x128xbf16>
    %5 = vector.shape_cast %4 : vector<1x10x128xbf16> to vector<10x128xbf16>
    %c0_5 = arith.constant 0 : index
    %c0_6 = arith.constant 0 : index
    %c0_7 = arith.constant 0 : index
    %6 = vector.load %arg4[%c0_5, %c0_6, %c0_7] : memref<1x10x128xbf16, #tpu.memory_space<vmem>>, vector<1x10x128xbf16>
    %7 = vector.shape_cast %6 : vector<1x10x128xbf16> to vector<10x128xbf16>
    %8 = vector.extract_strided_slice %3 {offsets = [0, 0], sizes = [10, 32], strides = [1, 1]} : vector<10x128xbf16> to vector<10x32xbf16>
    %9 = vector.extract_strided_slice %5 {offsets = [0, 0], sizes = [10, 32], strides = [1, 1]} : vector<10x128xbf16> to vector<10x32xbf16>
    %10 = vector.extract_strided_slice %7 {offsets = [0, 0], sizes = [10, 32], strides = [1, 1]} : vector<10x128xbf16> to vector<10x32xbf16>
    %11 = tpu.transpose %9, [1, 0] : vector<10x32xbf16> -> vector<32x10xbf16>
    %cst_8 = arith.constant dense<0.000000e+00> : vector<10x10xf32>
    %12 = tpu.matmul %8, %11, %cst_8 {dimension_numbers = #tpu.dot_dimension_numbers<[1], [0], [0], [1], [0, 0, 1, 1], [], []>} : vector<10x32xbf16>, vector<32x10xbf16>, vector<10x10xf32> -> vector<10x10xf32>
    %cst_9 = arith.constant dense<0xFF800000> : vector<10xf32>
    %13 = vector.multi_reduction <maximumf>, %12, %cst_9 [1] : vector<10x10xf32> to vector<10xf32>
    %14 = vector.shape_cast %13 : vector<10xf32> to vector<10x1xf32>
    %15 = vector.broadcast %14 : vector<10x1xf32> to vector<10x10xf32>
    %16 = arith.subf %12, %15 : vector<10x10xf32>
    %17 = math.exp %16 : vector<10x10xf32>
    %cst_10 = arith.constant dense<0.000000e+00> : vector<10xf32>
    %18 = vector.multi_reduction <add>, %17, %cst_10 [1] : vector<10x10xf32> to vector<10xf32>
    %19 = vector.shape_cast %18 : vector<10xf32> to vector<10x1xf32>
    %20 = tpu.reciprocal %19 {approx = true} : vector<10x1xf32> -> vector<10x1xf32>
    %21 = vector.broadcast %20 : vector<10x1xf32> to vector<10x10xf32>
    %22 = arith.mulf %17, %21 : vector<10x10xf32>
    %23 = arith.truncf %22 : vector<10x10xf32> to vector<10x10xbf16>
    %cst_11 = arith.constant dense<0.000000e+00> : vector<10x32xf32>
    %24 = tpu.matmul %23, %10, %cst_11 {dimension_numbers = #tpu.dot_dimension_numbers<[1], [0], [0], [1], [0, 0, 1, 1], [], []>} : vector<10x10xbf16>, vector<10x32xbf16>, vector<10x32xf32> -> vector<10x32xf32>
    %25 = vector.extract_strided_slice %3 {offsets = [0, 32], sizes = [10, 32], strides = [1, 1]} : vector<10x128xbf16> to vector<10x32xbf16>
    %26 = vector.extract_strided_slice %5 {offsets = [0, 32], sizes = [10, 32], strides = [1, 1]} : vector<10x128xbf16> to vector<10x32xbf16>
    %27 = vector.extract_strided_slice %7 {offsets = [0, 32], sizes = [10, 32], strides = [1, 1]} : vector<10x128xbf16> to vector<10x32xbf16>
    %28 = tpu.transpose %26, [1, 0] : vector<10x32xbf16> -> vector<32x10xbf16>
    %cst_12 = arith.constant dense<0.000000e+00> : vector<10x10xf32>
    %29 = tpu.matmul %25, %28, %cst_12 {dimension_numbers = #tpu.dot_dimension_numbers<[1], [0], [0], [1], [0, 0, 1, 1], [], []>} : vector<10x32xbf16>, vector<32x10xbf16>, vector<10x10xf32> -> vector<10x10xf32>
    %cst_13 = arith.constant dense<0xFF800000> : vector<10xf32>
    %30 = vector.multi_reduction <maximumf>, %29, %cst_13 [1] : vector<10x10xf32> to vector<10xf32>
    %31 = vector.shape_cast %30 : vector<10xf32> to vector<10x1xf32>
    %32 = vector.broadcast %31 : vector<10x1xf32> to vector<10x10xf32>
    %33 = arith.subf %29, %32 : vector<10x10xf32>
    %34 = math.exp %33 : vector<10x10xf32>
    %cst_14 = arith.constant dense<0.000000e+00> : vector<10xf32>
    %35 = vector.multi_reduction <add>, %34, %cst_14 [1] : vector<10x10xf32> to vector<10xf32>
    %36 = vector.shape_cast %35 : vector<10xf32> to vector<10x1xf32>
    %37 = tpu.reciprocal %36 {approx = true} : vector<10x1xf32> -> vector<10x1xf32>
    %38 = vector.broadcast %37 : vector<10x1xf32> to vector<10x10xf32>
    %39 = arith.mulf %34, %38 : vector<10x10xf32>
    %40 = arith.truncf %39 : vector<10x10xf32> to vector<10x10xbf16>
    %cst_15 = arith.constant dense<0.000000e+00> : vector<10x32xf32>
    %41 = tpu.matmul %40, %27, %cst_15 {dimension_numbers = #tpu.dot_dimension_numbers<[1], [0], [0], [1], [0, 0, 1, 1], [], []>} : vector<10x10xbf16>, vector<10x32xbf16>, vector<10x32xf32> -> vector<10x32xf32>
    %42 = vector.extract_strided_slice %3 {offsets = [0, 64], sizes = [10, 32], strides = [1, 1]} : vector<10x128xbf16> to vector<10x32xbf16>
    %43 = vector.extract_strided_slice %5 {offsets = [0, 64], sizes = [10, 32], strides = [1, 1]} : vector<10x128xbf16> to vector<10x32xbf16>
    %44 = vector.extract_strided_slice %7 {offsets = [0, 64], sizes = [10, 32], strides = [1, 1]} : vector<10x128xbf16> to vector<10x32xbf16>
    %45 = tpu.transpose %43, [1, 0] : vector<10x32xbf16> -> vector<32x10xbf16>
    %cst_16 = arith.constant dense<0.000000e+00> : vector<10x10xf32>
    %46 = tpu.matmul %42, %45, %cst_16 {dimension_numbers = #tpu.dot_dimension_numbers<[1], [0], [0], [1], [0, 0, 1, 1], [], []>} : vector<10x32xbf16>, vector<32x10xbf16>, vector<10x10xf32> -> vector<10x10xf32>
    %cst_17 = arith.constant dense<0xFF800000> : vector<10xf32>
    %47 = vector.multi_reduction <maximumf>, %46, %cst_17 [1] : vector<10x10xf32> to vector<10xf32>
    %48 = vector.shape_cast %47 : vector<10xf32> to vector<10x1xf32>
    %49 = vector.broadcast %48 : vector<10x1xf32> to vector<10x10xf32>
    %50 = arith.subf %46, %49 : vector<10x10xf32>
    %51 = math.exp %50 : vector<10x10xf32>
    %cst_18 = arith.constant dense<0.000000e+00> : vector<10xf32>
    %52 = vector.multi_reduction <add>, %51, %cst_18 [1] : vector<10x10xf32> to vector<10xf32>
    %53 = vector.shape_cast %52 : vector<10xf32> to vector<10x1xf32>
    %54 = tpu.reciprocal %53 {approx = true} : vector<10x1xf32> -> vector<10x1xf32>
    %55 = vector.broadcast %54 : vector<10x1xf32> to vector<10x10xf32>
    %56 = arith.mulf %51, %55 : vector<10x10xf32>
    %57 = arith.truncf %56 : vector<10x10xf32> to vector<10x10xbf16>
    %cst_19 = arith.constant dense<0.000000e+00> : vector<10x32xf32>
    %58 = tpu.matmul %57, %44, %cst_19 {dimension_numbers = #tpu.dot_dimension_numbers<[1], [0], [0], [1], [0, 0, 1, 1], [], []>} : vector<10x10xbf16>, vector<10x32xbf16>, vector<10x32xf32> -> vector<10x32xf32>
    %59 = vector.extract_strided_slice %3 {offsets = [0, 96], sizes = [10, 32], strides = [1, 1]} : vector<10x128xbf16> to vector<10x32xbf16>
    %60 = vector.extract_strided_slice %5 {offsets = [0, 96], sizes = [10, 32], strides = [1, 1]} : vector<10x128xbf16> to vector<10x32xbf16>
    %61 = vector.extract_strided_slice %7 {offsets = [0, 96], sizes = [10, 32], strides = [1, 1]} : vector<10x128xbf16> to vector<10x32xbf16>
    %62 = tpu.transpose %60, [1, 0] : vector<10x32xbf16> -> vector<32x10xbf16>
    %cst_20 = arith.constant dense<0.000000e+00> : vector<10x10xf32>
    %63 = tpu.matmul %59, %62, %cst_20 {dimension_numbers = #tpu.dot_dimension_numbers<[1], [0], [0], [1], [0, 0, 1, 1], [], []>} : vector<10x32xbf16>, vector<32x10xbf16>, vector<10x10xf32> -> vector<10x10xf32>
    %cst_21 = arith.constant dense<0xFF800000> : vector<10xf32>
    %64 = vector.multi_reduction <maximumf>, %63, %cst_21 [1] : vector<10x10xf32> to vector<10xf32>
    %65 = vector.shape_cast %64 : vector<10xf32> to vector<10x1xf32>
    %66 = vector.broadcast %65 : vector<10x1xf32> to vector<10x10xf32>
    %67 = arith.subf %63, %66 : vector<10x10xf32>
    %68 = math.exp %67 : vector<10x10xf32>
    %cst_22 = arith.constant dense<0.000000e+00> : vector<10xf32>
    %69 = vector.multi_reduction <add>, %68, %cst_22 [1] : vector<10x10xf32> to vector<10xf32>
    %70 = vector.shape_cast %69 : vector<10xf32> to vector<10x1xf32>
    %71 = tpu.reciprocal %70 {approx = true} : vector<10x1xf32> -> vector<10x1xf32>
    %72 = vector.broadcast %71 : vector<10x1xf32> to vector<10x10xf32>
    %73 = arith.mulf %68, %72 : vector<10x10xf32>
    %74 = arith.truncf %73 : vector<10x10xf32> to vector<10x10xbf16>
    %cst_23 = arith.constant dense<0.000000e+00> : vector<10x32xf32>
    %75 = tpu.matmul %74, %61, %cst_23 {dimension_numbers = #tpu.dot_dimension_numbers<[1], [0], [0], [1], [0, 0, 1, 1], [], []>} : vector<10x10xbf16>, vector<10x32xbf16>, vector<10x32xf32> -> vector<10x32xf32>
    %76 = tpu.concatenate %24, %41, %58, %75 in 1 : vector<10x32xf32>, vector<10x32xf32>, vector<10x32xf32>, vector<10x32xf32> -> vector<10x128xf32>
    %77 = arith.truncf %76 : vector<10x128xf32> to vector<10x128xbf16>
    %c0_24 = arith.constant 0 : index
    %c0_25 = arith.constant 0 : index
    %c0_26 = arith.constant 0 : index
    %78 = vector.load %arg5[%c0_24, %c0_25, %c0_26] : memref<1x10x128xbf16, #tpu.memory_space<vmem>>, vector<1x10x128xbf16>
    %79 = vector.shape_cast %78 : vector<1x10x128xbf16> to vector<10x128xbf16>
    %80 = vector.shape_cast %77 : vector<10x128xbf16> to vector<1x10x128xbf16>
    tpu.vector_store %arg5[%c0_24, %c0_25, %c0_26], %80 {strides = array<i32>} : memref<1x10x128xbf16, #tpu.memory_space<vmem>>, vector<1x10x128xbf16>,
    return
  }
  func.func @transform_0(%arg0: i32, %arg1: i32) -> (i32, i32, i32) {
    %c0_i32 = arith.constant 0 : i32
    %c0_i32_0 = arith.constant 0 : i32
    return %arg0, %c0_i32, %arg1 : i32, i32, i32
  }
  func.func @transform_1(%arg0: i32, %arg1: i32) -> (i32, i32, i32) {
    %c1_i32 = arith.constant 1 : i32
    %0 = arith.addi %c1_i32, %arg1 : i32
    %c0_i32 = arith.constant 0 : i32
    %c0_i32_0 = arith.constant 0 : i32
    return %arg0, %c0_i32, %0 : i32, i32, i32
  }
  func.func @transform_2(%arg0: i32, %arg1: i32) -> (i32, i32, i32) {
    %c2_i32 = arith.constant 2 : i32
    %0 = arith.addi %c2_i32, %arg1 : i32
    %c0_i32 = arith.constant 0 : i32
    %c0_i32_0 = arith.constant 0 : i32
    return %arg0, %c0_i32, %0 : i32, i32, i32
  }
  func.func @transform_3(%arg0: i32, %arg1: i32) -> (i32, i32, i32) {
    %c0_i32 = arith.constant 0 : i32
    %c0_i32_0 = arith.constant 0 : i32
    return %arg0, %c0_i32, %arg1 : i32, i32, i32
  }
}

module attributes {stable_mosaic.version = 11 : i64} {
  func.func @_linear_kernel(%arg0: i32, %arg1: i32, %arg2: memref<24x128xf32, #tpu.memory_space<vmem>>, %arg3: memref<128x512xbf16, #tpu.memory_space<vmem>>, %arg4: memref<1x512xf32, #tpu.memory_space<vmem>>, %arg5: memref<1x128xf32, #tpu.memory_space<vmem>>, %arg6: memref<1x128xf32, #tpu.memory_space<vmem>>, %arg7: memref<24x512xbf16, #tpu.memory_space<vmem>>) attributes {dimension_semantics = [#tpu.dimension_semantics<parallel>, #tpu.dimension_semantics<parallel>], iteration_bounds = array<i64: 1, 1>, scalar_prefetch = 0 : i64, scratch_operands = 0 : i64, tpu.core_type = #tpu.core_type<tc>, window_params = [{transform_indices = @transform_0, window_bounds = array<i64: 24, 128>}, {transform_indices = @transform_1, window_bounds = array<i64: 128, 512>}, {transform_indices = @transform_2, window_bounds = array<i64: 1, 512>}, {pipeline_mode = #tpu.pipeline_mode<synchronous>, transform_indices = @transform_3, window_bounds = array<i64: 1, 128>}, {pipeline_mode = #tpu.pipeline_mode<synchronous>, transform_indices = @transform_4, window_bounds = array<i64: 1, 128>}, {transform_indices = @transform_5, window_bounds = array<i64: 24, 512>}]} {
    %c0 = arith.constant 0 : index
    %c0_0 = arith.constant 0 : index
    %0 = vector.load %arg2[%c0, %c0_0] : memref<24x128xf32, #tpu.memory_space<vmem>>, vector<24x128xf32>
    %cst = arith.constant dense<0.000000e+00> : vector<24xf32>
    %1 = vector.multi_reduction <add>, %0, %cst [1] : vector<24x128xf32> to vector<24xf32>
    %2 = vector.shape_cast %1 : vector<24xf32> to vector<24x1xf32>
    %cst_1 = arith.constant 1.280000e+02 : f32
    %3 = vector.broadcast %cst_1 : f32 to vector<24x1xf32>
    %4 = arith.divf %2, %3 : vector<24x1xf32>
    %5 = vector.broadcast %4 : vector<24x1xf32> to vector<24x128xf32>
    %6 = arith.subf %0, %5 : vector<24x128xf32>
    %7 = arith.mulf %6, %6 : vector<24x128xf32>
    %cst_2 = arith.constant dense<0.000000e+00> : vector<24xf32>
    %8 = vector.multi_reduction <add>, %7, %cst_2 [1] : vector<24x128xf32> to vector<24xf32>
    %9 = vector.shape_cast %8 : vector<24xf32> to vector<24x1xf32>
    %cst_3 = arith.constant 1.280000e+02 : f32
    %10 = vector.broadcast %cst_3 : f32 to vector<24x1xf32>
    %11 = arith.divf %9, %10 : vector<24x1xf32>
    %12 = vector.broadcast %4 : vector<24x1xf32> to vector<24x128xf32>
    %13 = arith.subf %0, %12 : vector<24x128xf32>
    %cst_4 = arith.constant 9.99999997E-7 : f32
    %14 = vector.broadcast %cst_4 : f32 to vector<24x1xf32>
    %15 = arith.addf %11, %14 : vector<24x1xf32>
    %16 = math.rsqrt %15 : vector<24x1xf32>
    %17 = vector.broadcast %16 : vector<24x1xf32> to vector<24x128xf32>
    %18 = arith.mulf %13, %17 : vector<24x128xf32>
    %c0_5 = arith.constant 0 : index
    %c0_6 = arith.constant 0 : index
    %19 = vector.load %arg5[%c0_5, %c0_6] : memref<1x128xf32, #tpu.memory_space<vmem>>, vector<1x128xf32>
    %20 = vector.broadcast %19 : vector<1x128xf32> to vector<24x128xf32>
    %21 = arith.mulf %18, %20 : vector<24x128xf32>
    %c0_7 = arith.constant 0 : index
    %c0_8 = arith.constant 0 : index
    %22 = vector.load %arg6[%c0_7, %c0_8] : memref<1x128xf32, #tpu.memory_space<vmem>>, vector<1x128xf32>
    %23 = vector.broadcast %22 : vector<1x128xf32> to vector<24x128xf32>
    %24 = arith.addf %21, %23 : vector<24x128xf32>
    %25 = arith.truncf %24 : vector<24x128xf32> to vector<24x128xbf16>
    %c0_9 = arith.constant 0 : index
    %c0_10 = arith.constant 0 : index
    %26 = vector.load %arg3[%c0_9, %c0_10] : memref<128x512xbf16, #tpu.memory_space<vmem>>, vector<128x512xbf16>
    %cst_11 = arith.constant dense<0.000000e+00> : vector<24x512xf32>
    %27 = tpu.matmul %25, %26, %cst_11 {dimension_numbers = #tpu.dot_dimension_numbers<[1], [0], [0], [1], [0, 0, 1, 1], [], []>} : vector<24x128xbf16>, vector<128x512xbf16>, vector<24x512xf32> -> vector<24x512xf32>
    %c0_12 = arith.constant 0 : index
    %c0_13 = arith.constant 0 : index
    %28 = vector.load %arg4[%c0_12, %c0_13] : memref<1x512xf32, #tpu.memory_space<vmem>>, vector<1x512xf32>
    %29 = vector.broadcast %28 : vector<1x512xf32> to vector<24x512xf32>
    %30 = arith.addf %27, %29 : vector<24x512xf32>
    %cst_14 = arith.constant 5.000000e-01 : f32
    %31 = vector.broadcast %cst_14 : f32 to vector<24x512xf32>
    %32 = arith.mulf %31, %30 : vector<24x512xf32>
    %cst_15 = arith.constant 0.707106769 : f32
    %33 = vector.broadcast %cst_15 : f32 to vector<24x512xf32>
    %34 = arith.mulf %30, %33 : vector<24x512xf32>
    %35 = math.absf %34 : vector<24x512xf32>
    %cst_16 = arith.constant 0.327591091 : f32
    %36 = vector.broadcast %cst_16 : f32 to vector<24x512xf32>
    %37 = arith.mulf %36, %35 : vector<24x512xf32>
    %cst_17 = arith.constant 1.000000e+00 : f32
    %38 = vector.broadcast %cst_17 : f32 to vector<24x512xf32>
    %39 = arith.addf %38, %37 : vector<24x512xf32>
    %cst_18 = arith.constant 1.000000e+00 : f32
    %40 = vector.broadcast %cst_18 : f32 to vector<24x512xf32>
    %41 = arith.divf %40, %39 : vector<24x512xf32>
    %cst_19 = arith.constant 1.06140542 : f32
    %42 = vector.broadcast %cst_19 : f32 to vector<24x512xf32>
    %43 = arith.mulf %42, %41 : vector<24x512xf32>
    %cst_20 = arith.constant -1.45315206 : f32
    %44 = vector.broadcast %cst_20 : f32 to vector<24x512xf32>
    %45 = arith.addf %43, %44 : vector<24x512xf32>
    %46 = arith.mulf %45, %41 : vector<24x512xf32>
    %cst_21 = arith.constant 1.42141378 : f32
    %47 = vector.broadcast %cst_21 : f32 to vector<24x512xf32>
    %48 = arith.addf %46, %47 : vector<24x512xf32>
    %49 = arith.mulf %48, %41 : vector<24x512xf32>
    %cst_22 = arith.constant -0.284496725 : f32
    %50 = vector.broadcast %cst_22 : f32 to vector<24x512xf32>
    %51 = arith.addf %49, %50 : vector<24x512xf32>
    %52 = arith.mulf %51, %41 : vector<24x512xf32>
    %cst_23 = arith.constant 0.254829586 : f32
    %53 = vector.broadcast %cst_23 : f32 to vector<24x512xf32>
    %54 = arith.addf %52, %53 : vector<24x512xf32>
    %55 = arith.mulf %54, %41 : vector<24x512xf32>
    %cst_24 = arith.constant 0.000000e+00 : f32
    %56 = vector.broadcast %cst_24 : f32 to vector<24x512xf32>
    %57 = arith.subf %56, %35 : vector<24x512xf32>
    %58 = arith.mulf %57, %35 : vector<24x512xf32>
    %59 = math.exp %58 : vector<24x512xf32>
    %60 = arith.mulf %55, %59 : vector<24x512xf32>
    %cst_25 = arith.constant 1.000000e+00 : f32
    %61 = vector.broadcast %cst_25 : f32 to vector<24x512xf32>
    %62 = arith.subf %61, %60 : vector<24x512xf32>
    %cst_26 = arith.constant 0.000000e+00 : f32
    %63 = vector.broadcast %cst_26 : f32 to vector<24x512xf32>
    %64 = arith.cmpf oge, %34, %63 : vector<24x512xf32>
    %cst_27 = arith.constant 0.000000e+00 : f32
    %65 = vector.broadcast %cst_27 : f32 to vector<24x512xf32>
    %66 = arith.subf %65, %62 : vector<24x512xf32>
    %67 = arith.select %64, %62, %66 : vector<24x512xi1>, vector<24x512xf32>
    %cst_28 = arith.constant 1.000000e+00 : f32
    %68 = vector.broadcast %cst_28 : f32 to vector<24x512xf32>
    %69 = arith.addf %68, %67 : vector<24x512xf32>
    %70 = arith.mulf %32, %69 : vector<24x512xf32>
    %71 = arith.truncf %70 : vector<24x512xf32> to vector<24x512xbf16>
    %c0_29 = arith.constant 0 : index
    %c0_30 = arith.constant 0 : index
    %72 = vector.load %arg7[%c0_29, %c0_30] : memref<24x512xbf16, #tpu.memory_space<vmem>>, vector<24x512xbf16>
    tpu.vector_store %arg7[%c0_29, %c0_30], %71 {strides = array<i32>} : memref<24x512xbf16, #tpu.memory_space<vmem>>, vector<24x512xbf16>,
    return
  }
  func.func @transform_0(%arg0: i32, %arg1: i32) -> (i32, i32) {
    %c0_i32 = arith.constant 0 : i32
    %c0_i32_0 = arith.constant 0 : i32
    return %arg0, %c0_i32 : i32, i32
  }
  func.func @transform_1(%arg0: i32, %arg1: i32) -> (i32, i32) {
    %c0_i32 = arith.constant 0 : i32
    %c0_i32_0 = arith.constant 0 : i32
    return %c0_i32, %arg1 : i32, i32
  }
  func.func @transform_2(%arg0: i32, %arg1: i32) -> (i32, i32) {
    %c0_i32 = arith.constant 0 : i32
    %c0_i32_0 = arith.constant 0 : i32
    return %c0_i32, %arg1 : i32, i32
  }
  func.func @transform_3(%arg0: i32, %arg1: i32) -> (i32, i32) {
    %c0_i32 = arith.constant 0 : i32
    %c0_i32_0 = arith.constant 0 : i32
    %c0_i32_1 = arith.constant 0 : i32
    return %c0_i32, %c0_i32_0 : i32, i32
  }
  func.func @transform_4(%arg0: i32, %arg1: i32) -> (i32, i32) {
    %c0_i32 = arith.constant 0 : i32
    %c0_i32_0 = arith.constant 0 : i32
    %c0_i32_1 = arith.constant 0 : i32
    return %c0_i32, %c0_i32_0 : i32, i32
  }
  func.func @transform_5(%arg0: i32, %arg1: i32) -> (i32, i32) {
    %c0_i32 = arith.constant 0 : i32
    return %arg0, %arg1 : i32, i32
  }
}

module attributes {stable_mosaic.version = 11 : i64} {
  func.func @_linear_kernel(%arg0: i32, %arg1: i32, %arg2: memref<24x512xbf16, #tpu.memory_space<vmem>>, %arg3: memref<512x128xbf16, #tpu.memory_space<vmem>>, %arg4: memref<1x128xf32, #tpu.memory_space<vmem>>, %arg5: memref<24x128xf32, #tpu.memory_space<vmem>>, %arg6: memref<24x128xf32, #tpu.memory_space<vmem>>) attributes {dimension_semantics = [#tpu.dimension_semantics<parallel>, #tpu.dimension_semantics<parallel>], iteration_bounds = array<i64: 1, 1>, scalar_prefetch = 0 : i64, scratch_operands = 0 : i64, tpu.core_type = #tpu.core_type<tc>, window_params = [{transform_indices = @transform_0, window_bounds = array<i64: 24, 512>}, {transform_indices = @transform_1, window_bounds = array<i64: 512, 128>}, {transform_indices = @transform_2, window_bounds = array<i64: 1, 128>}, {transform_indices = @transform_3, window_bounds = array<i64: 24, 128>}, {transform_indices = @transform_4, window_bounds = array<i64: 24, 128>}]} {
    %c0 = arith.constant 0 : index
    %c0_0 = arith.constant 0 : index
    %0 = vector.load %arg2[%c0, %c0_0] : memref<24x512xbf16, #tpu.memory_space<vmem>>, vector<24x512xbf16>
    %c0_1 = arith.constant 0 : index
    %c0_2 = arith.constant 0 : index
    %1 = vector.load %arg3[%c0_1, %c0_2] : memref<512x128xbf16, #tpu.memory_space<vmem>>, vector<512x128xbf16>
    %cst = arith.constant dense<0.000000e+00> : vector<24x128xf32>
    %2 = tpu.matmul %0, %1, %cst {dimension_numbers = #tpu.dot_dimension_numbers<[1], [0], [0], [1], [0, 0, 1, 1], [], []>} : vector<24x512xbf16>, vector<512x128xbf16>, vector<24x128xf32> -> vector<24x128xf32>
    %c0_3 = arith.constant 0 : index
    %c0_4 = arith.constant 0 : index
    %3 = vector.load %arg4[%c0_3, %c0_4] : memref<1x128xf32, #tpu.memory_space<vmem>>, vector<1x128xf32>
    %4 = vector.broadcast %3 : vector<1x128xf32> to vector<24x128xf32>
    %5 = arith.addf %2, %4 : vector<24x128xf32>
    %c0_5 = arith.constant 0 : index
    %c0_6 = arith.constant 0 : index
    %6 = vector.load %arg5[%c0_5, %c0_6] : memref<24x128xf32, #tpu.memory_space<vmem>>, vector<24x128xf32>
    %7 = arith.addf %5, %6 : vector<24x128xf32>
    %c0_7 = arith.constant 0 : index
    %c0_8 = arith.constant 0 : index
    %8 = vector.load %arg6[%c0_7, %c0_8] : memref<24x128xf32, #tpu.memory_space<vmem>>, vector<24x128xf32>
    tpu.vector_store %arg6[%c0_7, %c0_8], %7 {strides = array<i32>} : memref<24x128xf32, #tpu.memory_space<vmem>>, vector<24x128xf32>,
    return
  }
  func.func @transform_0(%arg0: i32, %arg1: i32) -> (i32, i32) {
    %c0_i32 = arith.constant 0 : i32
    %c0_i32_0 = arith.constant 0 : i32
    return %arg0, %c0_i32 : i32, i32
  }
  func.func @transform_1(%arg0: i32, %arg1: i32) -> (i32, i32) {
    %c0_i32 = arith.constant 0 : i32
    %c0_i32_0 = arith.constant 0 : i32
    return %c0_i32, %arg1 : i32, i32
  }
  func.func @transform_2(%arg0: i32, %arg1: i32) -> (i32, i32) {
    %c0_i32 = arith.constant 0 : i32
    %c0_i32_0 = arith.constant 0 : i32
    return %c0_i32, %arg1 : i32, i32
  }
  func.func @transform_3(%arg0: i32, %arg1: i32) -> (i32, i32) {
    %c0_i32 = arith.constant 0 : i32
    return %arg0, %arg1 : i32, i32
  }
  func.func @transform_4(%arg0: i32, %arg1: i32) -> (i32, i32) {
    %c0_i32 = arith.constant 0 : i32
    return %arg0, %arg1 : i32, i32
  }
}

</mosaic_0001>

<bundles_post_ra>
// kernel: _lambda_.11
= control target key start
LH: loop header
LB: loop body
LE: loop exit
PB: predicated region body
PF: predicated region fallthrough
CT: control target
= control target key end

     0   :  { %s925_s1 = inlined_call_operand.vmem [shape: bf16[768,128], index: 1, kind: input, shape index: {}]   ;;  %s926_s0 = inlined_call_operand.vmem [shape: f32[16,768], index: 0, kind: input, shape index: {}]   ;;  %s927_s2 = inlined_call_operand.vmem [shape: f32[1,128], index: 2, kind: input, shape index: {}]   ;;  %s928_s3 = inlined_call_operand.vmem [shape: f32[16,128], index: 3, kind: output, shape index: {}]  }
   0x1   :  { %v668_v0 = vld [vmem:[%s925_s1 + $0x40] sm:$0xff]   ;;  %v672_v4 = vld [vmem:[%s925_s1 + $0x48] sm:$0xff]   ;;  %v676_v8 = vld [vmem:[%s925_s1 + $0x50] sm:$0xff]  }
   0x2   :  { %v669_v1 = vld [vmem:[%s925_s1] sm:$0xff]   ;;  %602 = vmatprep.subr.bf16.mxu0 %v668_v0  ;;  %v673_v5 = vld [vmem:[%s925_s1 + $0x8] sm:$0xff]   ;;  %v677_v9 = vld [vmem:[%s925_s1 + $0x10] sm:$0xff]  }
   0x3   :  { %v670_v2 = vld [vmem:[%s925_s1 + $0xc0] sm:$0xff]   ;;  %603 = vmatpush3.bf16.msra.mxu0 %v669_v1  ;;  %v674_v6 = vld [vmem:[%s925_s1 + $0xc8] sm:$0xff]   ;;  %v678_v10 = vld [vmem:[%s925_s1 + $0xd0] sm:$0xff]  }
   0x4   :  { %v671_v3 = vld [vmem:[%s925_s1 + $0x80] sm:$0xff]   ;;  %624 = vmatprep.subr.bf16.mxu1 %v670_v2  ;;  %604 = vmatprep.subr.bf16.mxu0 %v672_v4  ;;  %v675_v7 = vld [vmem:[%s925_s1 + $0x88] sm:$0xff]   ;;  %v679_v11 = vld [vmem:[%s925_s1 + $0x90] sm:$0xff]  }
   0x5   :  { %625 = vmatpush3.bf16.msra.mxu1 %v671_v3  ;;  %v680_v12 = vld [vmem:[%s925_s1 + $0x58] sm:$0xff]   ;;  %v684_v16 = vld [vmem:[%s925_s1 + $0x60] sm:$0xff]   ;;  %v688_v20 = vld [vmem:[%s925_s1 + $0x68] sm:$0xff]  }
   0x6   :  { %626 = vmatprep.subr.bf16.mxu1 %v674_v6  ;;  %v681_v13 = vld [vmem:[%s925_s1 + $0x18] sm:$0xff]   ;;  %v685_v17 = vld [vmem:[%s925_s1 + $0x20] sm:$0xff]   ;;  %v689_v21 = vld [vmem:[%s925_s1 + $0x28] sm:$0xff]  }
   0x7   :  { %605 = vmatpush3.bf16.msra.mxu0 %v673_v5  ;;  %v682_v14 = vld [vmem:[%s925_s1 + $0xd8] sm:$0xff]   ;;  %v686_v18 = vld [vmem:[%s925_s1 + $0xe0] sm:$0xff]   ;;  %v690_v22 = vld [vmem:[%s925_s1 + $0xe8] sm:$0xff]  }
   0x8   :  { %606 = vmatprep.subr.bf16.mxu0 %v676_v8  ;;  %v683_v15 = vld [vmem:[%s925_s1 + $0x98] sm:$0xff]   ;;  %v687_v19 = vld [vmem:[%s925_s1 + $0xa0] sm:$0xff]   ;;  %v691_v23 = vld [vmem:[%s925_s1 + $0xa8] sm:$0xff]  }
   0x9   :  { %627 = vmatpush3.bf16.msra.mxu1 %v675_v7  ;;  %v692_v24 = vld [vmem:[%s925_s1 + $0x70] sm:$0xff]   ;;  %v696_v28 = vld [vmem:[%s925_s1 + $0x78] sm:$0xff]   ;;  %v16_v31 = vld [vmem:[%s926_s0 + $0x8] sm:$0xff] }
   0xa   :  { %628 = vmatprep.subr.bf16.mxu1 %v678_v10  ;;  %v693_v25 = vld [vmem:[%s925_s1 + $0x30] sm:$0xff]   ;;  %v697_v29 = vld [vmem:[%s925_s1 + $0x38] sm:$0xff]   ;;  %v15_v35 = vld [vmem:[%s926_s0] sm:$0xff] }
   0xb   :  { %607 = vmatpush3.bf16.msra.mxu0 %v677_v9  ;;  %v694_v26 = vld [vmem:[%s925_s1 + $0xf0] sm:$0xff]   ;;  %v698_v30 = vld [vmem:[%s925_s1 + $0xf8] sm:$0xff]   ;;  %v700_v38 = vld [vmem:[%s925_s1 + $0x140] sm:$0xff]  }
   0xc   :  { %608 = vmatprep.subr.bf16.mxu0 %v680_v12  ;;  %v695_v27 = vld [vmem:[%s925_s1 + $0xb0] sm:$0xff]   ;;  %v22_v32 = vld [vmem:[%s926_s0 + $0x38] sm:$0xff]  ;;  %v24_v40 = vld [vmem:[%s926_s0 + $0x48] sm:$0xff] }
   0xd   :  { %629 = vmatpush3.bf16.msra.mxu1 %v679_v11  ;;  %v28_v33 = vpack.c.bf16 %v22_v32, %v16_v31  ;;  %v699_v34 = vld [vmem:[%s925_s1 + $0xb8] sm:$0xff]   ;;  %v21_v36 = vld [vmem:[%s926_s0 + $0x30] sm:$0xff]  ;;  %v701_v42 = vld [vmem:[%s925_s1 + $0x100] sm:$0xff]  }
   0xe   :  { %630 = vmatprep.subr.bf16.mxu1 %v682_v14  ;;  %v27_v37 = vpack.c.bf16 %v21_v36, %v15_v35  ;;  %v18_v39 = vld [vmem:[%s926_s0 + $0x18] sm:$0xff]  ;;  %v17_v43 = vld [vmem:[%s926_s0 + $0x10] sm:$0xff]  ;;  %v23_v44 = vld [vmem:[%s926_s0 + $0x40] sm:$0xff] }
   0xf   :  { %609 = vmatpush3.bf16.msra.mxu0 %v681_v13  ;;  %456 = vmatprep.mubr.bf16.mxu0 %v28_v33  ;;  %v30_v41 = vpack.c.bf16 %v24_v40, %v18_v39  ;;  %v29_v45 = vpack.c.bf16 %v23_v44, %v17_v43  ;;  %v702_v46 = vld [vmem:[%s925_s1 + $0x148] sm:$0xff]   ;;  %v704_v48 = vld [vmem:[%s925_s1 + $0x150] sm:$0xff]   ;;  %v706_v50 = vld [vmem:[%s925_s1 + $0x158] sm:$0xff]  }
  0x10   :  { %610 = vmatprep.subr.bf16.mxu0 %v684_v16  ;;  %v703_v47 = vld [vmem:[%s925_s1 + $0x108] sm:$0xff]   ;;  %v705_v49 = vld [vmem:[%s925_s1 + $0x110] sm:$0xff]   ;;  %v707_v51 = vld [vmem:[%s925_s1 + $0x118] sm:$0xff]  }
  0x11   :  { %631 = vmatpush3.bf16.msra.mxu1 %v683_v15  ;;  %497 = vmatprep.mubr.bf16.mxu1 %v30_v41  ;;  %v708_v52 = vld [vmem:[%s925_s1 + $0x160] sm:$0xff]   ;;  %v710_v54 = vld [vmem:[%s925_s1 + $0x168] sm:$0xff]   ;;  %v26_v56 = vld [vmem:[%s926_s0 + $0x58] sm:$0xff] }
  0x12   :  { %632 = vmatprep.subr.bf16.mxu1 %v686_v18  ;;  %v709_v53 = vld [vmem:[%s925_s1 + $0x120] sm:$0xff]   ;;  %v20_v55 = vld [vmem:[%s926_s0 + $0x28] sm:$0xff]  ;;  %v712_v59 = vld [vmem:[%s925_s1 + $0x170] sm:$0xff]  }
  0x13   :  { %611 = vmatpush3.bf16.msra.mxu0 %v685_v17  ;;  %v32_v57 = vpack.c.bf16 %v26_v56, %v20_v55  ;;  %v711_v58 = vld [vmem:[%s925_s1 + $0x128] sm:$0xff]   ;;  %v713_v60 = vld [vmem:[%s925_s1 + $0x130] sm:$0xff]   ;;  %v714_v61 = vld [vmem:[%s925_s1 + $0x178] sm:$0xff]  }
  0x14   :  { %612 = vmatprep.subr.bf16.mxu0 %v688_v20  ;;  %v715_v62 = vld [vmem:[%s925_s1 + $0x138] sm:$0xff]   ;;  %v19_v63 = vld [vmem:[%s926_s0 + $0x20] sm:$0xff]  ;;  %v25_v0 = vld [vmem:[%s926_s0 + $0x50] sm:$0xff] }
  0x15   :  { %633 = vmatpush3.bf16.msra.mxu1 %v687_v19  ;;  %v31_v1 = vpack.c.bf16 %v25_v0, %v19_v63  ;;  %v553_v3 = vld [vmem:[%s927_s2] ss:$0 sm:$0xff] }
  0x16   :  { %634 = vmatprep.subr.bf16.mxu1 %v690_v22 }
  0x17   :  { %613 = vmatpush3.bf16.msra.mxu0 %v689_v21 }
  0x18   :  { %614 = vmatprep.subr.bf16.mxu0 %v692_v24 }
  0x19   :  { %635 = vmatpush3.bf16.msra.mxu1 %v691_v23 }
  0x1a   :  { %636 = vmatprep.subr.bf16.mxu1 %v694_v26 }
  0x1b   :  { %615 = vmatpush3.bf16.msra.mxu0 %v693_v25 }
  0x1c   :  { %616 = vmatprep.subr.bf16.mxu0 %v696_v28 }
  0x1d   :  { %637 = vmatpush3.bf16.msra.mxu1 %v695_v27 }
  0x1e   :  { %638 = vmatprep.subr.bf16.mxu1 %v698_v30 }
  0x1f   :  { %617 = vmatpush3.bf16.msra.mxu0 %v697_v29 }
  0x20   :  { %646 = vmatprep.subr.bf16.mxu0 %v700_v38 }
  0x21   :  { %639 = vmatpush3.bf16.msra.mxu1 %v699_v34 }
  0x22   :  { %457 = vmatmul.mubr.bf16.vlgmr.msra.gmra.mrb[0].mxu0 %v27_v37 }
  0x23   :  { %647 = vmatpush3.bf16.msra.mxu0 %v701_v42  ;;  %538 = vmatprep.mubr.bf16.mxu0 %v32_v57 }
  0x24   :  { %498 = vmatmul.mubr.bf16.vlgmr.msra.gmra.mrb[0].mxu1 %v29_v45  ;;  %648 = vmatprep.subr.bf16.mxu0 %v702_v46 }
  0x27   :  { %649 = vmatpush3.bf16.msra.mxu0 %v703_v47 }
  0x28   :  { %650 = vmatprep.subr.bf16.mxu0 %v704_v48 }
  0x2b   :  { %651 = vmatpush3.bf16.msra.mxu0 %v705_v49 }
  0x2c   :  { %652 = vmatprep.subr.bf16.mxu0 %v706_v50 }
  0x2f   :  { %653 = vmatpush3.bf16.msra.mxu0 %v707_v51 }
  0x30   :  { %654 = vmatprep.subr.bf16.mxu0 %v708_v52 }
  0x33   :  { %655 = vmatpush3.bf16.msra.mxu0 %v709_v53 }
  0x34   :  { %656 = vmatprep.subr.bf16.mxu0 %v710_v54 }
  0x37   :  { %657 = vmatpush3.bf16.msra.mxu0 %v711_v58 }
  0x38   :  { %658 = vmatprep.subr.bf16.mxu0 %v712_v59 }
  0x3b   :  { %659 = vmatpush3.bf16.msra.mxu0 %v713_v60 }
  0x3c   :  { %660 = vmatprep.subr.bf16.mxu0 %v714_v61 }
  0x3f   :  { %661 = vmatpush3.bf16.msra.mxu0 %v715_v62 }
  0x42   :  { %539 = vmatmul.mubr.bf16.vlgmr.msra.gmra.mrb[4].mxu0 %v31_v1 }
  0xf5   :  { %v618_v2 = vpop.f32.mrb[0].mxu0 }
  0xf6   :  { %v619_v4 = vpop.f32.mrb[1].mxu0 }
  0xf7   :  { %v620_v5 = vadd.f32 %v619_v4, %v618_v2  ;;  %v621_v6 = vpop.f32.mrb[2].mxu0  ;;  %v640_v7 = vpop.f32.mrb[0].mxu1 }
  0xf8   :  { %v622_v8 = vpop.f32.mrb[3].mxu0  ;;  %v641_v11 = vpop.f32.mrb[1].mxu1 }
  0xf9   :  { %v459_v9 = vadd.f32 %v620_v5, %v553_v3  ;;  %v623_v10 = vadd.f32 %v622_v8, %v621_v6  ;;  %v642_v12 = vadd.f32 %v641_v11, %v640_v7  ;;  %v643_v13 = vpop.f32.mrb[2].mxu1 }
  0xfa   :  { %v644_v15 = vpop.f32.mrb[3].mxu1 }
  0xfb   :  { %v462_v14 = vadd.f32 %v623_v10, %v553_v3  ;;  %v500_v16 = vadd.f32 %v642_v12, %v459_v9  ;;  %v645_v17 = vadd.f32 %v644_v15, %v643_v13 }
  0xfd   :  { %v503_v18 = vadd.f32 %v645_v17, %v462_v14 }
 0x115   :  { %v662_v19 = vpop.f32.mrb[4].mxu0 }
 0x116   :  { %v663_v20 = vpop.f32.mrb[5].mxu0 }
 0x117   :  { %v664_v21 = vadd.f32 %v663_v20, %v662_v19  ;;  %v665_v22 = vpop.f32.mrb[6].mxu0 }
 0x118   :  { %v666_v23 = vpop.f32.mrb[7].mxu0 }
 0x119   :  { %v541_v24 = vadd.f32 %v664_v21, %v500_v16  ;;  %v667_v25 = vadd.f32 %v666_v23, %v665_v22 }
 0x11b   :  { %547 = vst [vmem:[%s928_s3] sm:$0xff] %v541_v24  ;;  %v544_v26 = vadd.f32 %v667_v25, %v503_v18 }
 0x11d   :  { %548 = vst [vmem:[%s928_s3 + $0x8] sm:$0xff] %v544_v26 }

// kernel: _lambda_.12
= control target key start
LH: loop header
LB: loop body
LE: loop exit
PB: predicated region body
PF: predicated region fallthrough
CT: control target
= control target key end

     0   :  { %v506_v35 = vmov 0   ;;  %s660_s0 = inlined_call_operand.vmem [shape: f32[24,128], index: 0, kind: input, shape index: {}]   ;;  %s661_s1 = inlined_call_operand.vmem [shape: bf16[128,384], index: 1, kind: input, shape index: {}]   ;;  %s662_s3 = inlined_call_operand.vmem [shape: f32[1,128], index: 3, kind: input, shape index: {}]   ;;  %s663_s4 = inlined_call_operand.vmem [shape: f32[1,128], index: 4, kind: input, shape index: {}]   ;;  %s664_s2 = inlined_call_operand.vmem [shape: f32[1,384], index: 2, kind: input, shape index: {}]   ;;  %s665_s5 = inlined_call_operand.vmem [shape: bf16[24,384], index: 5, kind: output, shape index: {}]  }
   0x1   :  { %v21_v0 = vld [vmem:[%s660_s0] sm:$0xff]  ;;  %v23_v1 = vld [vmem:[%s660_s0 + $0x10] sm:$0xff]  ;;  %v22_v2 = vld [vmem:[%s660_s0 + $0x8] sm:$0xff]  ;;  %289 = vmatprep.mubr.bf16.mxu0 %v506_v35 }
   0x2   :  { %24 = vadd.xlane.f32.xlu0 %v21_v0  ;;  %28 = vadd.xlane.f32.xlu1 %v23_v1  ;;  %v468_v3 = vld [vmem:[%s661_s1 + $0x4] ss:$12 sps:$4 sm:$0xff]   ;;  %v470_v4 = vld [vmem:[%s661_s1] ss:$12 sps:$4 sm:$0xff]   ;;  %v471_v5 = vld [vmem:[%s661_s1 + $0x8] ss:$12 sps:$4 sm:$0xff]  }
   0x3   :  { %257 = vmatprep.subr.bf16.mxu0 %v468_v3  ;;  %v472_v6 = vld [vmem:[%s661_s1 + $0x1c] ss:$12 sps:$4 sm:$0xff]   ;;  %447 = vmatprep.subr.bf16.mxu1 %v471_v5  ;;  %v474_v19 = vld [vmem:[%s661_s1 + $0x18] ss:$12 sps:$4 sm:$0xff]   ;;  %v475_v20 = vld [vmem:[%s661_s1 + $0x20] ss:$12 sps:$4 sm:$0xff]  }
   0x4   :  { %258 = vmatpush1.bf16.msra.mxu0 %v470_v4  ;;  %448 = vmatpush3.bf16.msra.mxu1 %v471_v5  ;;  %v476_v21 = vld [vmem:[%s661_s1 + $0x34] ss:$12 sps:$4 sm:$0xff]   ;;  %v478_v22 = vld [vmem:[%s661_s1 + $0x30] ss:$12 sps:$4 sm:$0xff]   ;;  %v479_v23 = vld [vmem:[%s661_s1 + $0x38] ss:$12 sps:$4 sm:$0xff]  }
   0x5   :  { %259 = vmatprep.subr.bf16.mxu0 %v472_v6  ;;  %449 = vmatprep.subr.bf16.mxu1 %v475_v20  ;;  %v480_v24 = vld [vmem:[%s661_s1 + $0x4c] ss:$12 sps:$4 sm:$0xff]   ;;  %v482_v25 = vld [vmem:[%s661_s1 + $0x48] ss:$12 sps:$4 sm:$0xff]   ;;  %v483_v26 = vld [vmem:[%s661_s1 + $0x50] ss:$12 sps:$4 sm:$0xff]  }
   0x6   :  { %26 = vadd.xlane.f32.xlu0 %v22_v2  ;;  %v484_v27 = vld [vmem:[%s661_s1 + $0x64] ss:$12 sps:$4 sm:$0xff]   ;;  %v486_v28 = vld [vmem:[%s661_s1 + $0x60] ss:$12 sps:$4 sm:$0xff]   ;;  %v487_v29 = vld [vmem:[%s661_s1 + $0x68] ss:$12 sps:$4 sm:$0xff]  }
   0x7   :  { %v488_v30 = vld [vmem:[%s661_s1 + $0x7c] ss:$12 sps:$4 sm:$0xff]   ;;  %v491_v31 = vld [vmem:[%s661_s1 + $0x80] ss:$12 sps:$4 sm:$0xff]   ;;  %v490_v32 = vld [vmem:[%s661_s1 + $0x78] ss:$12 sps:$4 sm:$0xff]  }
   0x8   :  { %260 = vmatpush1.bf16.msra.mxu0 %v474_v19  ;;  %450 = vmatpush3.bf16.msra.mxu1 %v475_v20  ;;  %v492_v33 = vld [vmem:[%s661_s1 + $0x94] ss:$12 sps:$4 sm:$0xff]   ;;  %v495_v34 = vld [vmem:[%s661_s1 + $0x98] ss:$12 sps:$4 sm:$0xff]   ;;  %v494_v36 = vld [vmem:[%s661_s1 + $0x90] ss:$12 sps:$4 sm:$0xff]  }
   0x9   :  { %261 = vmatprep.subr.bf16.mxu0 %v476_v21  ;;  %451 = vmatprep.subr.bf16.mxu1 %v479_v23  ;;  %v496_v37 = vld [vmem:[%s661_s1 + $0xac] ss:$12 sps:$4 sm:$0xff]   ;;  %v499_v38 = vld [vmem:[%s661_s1 + $0xb0] ss:$12 sps:$4 sm:$0xff]   ;;  %v498_v39 = vld [vmem:[%s661_s1 + $0xa8] ss:$12 sps:$4 sm:$0xff]  }
   0xa   :  { %v399_v51 = vld [vmem:[%s662_s3] ss:$0 sm:$0xff] }
   0xb   :  { %v400_v57 = vld [vmem:[%s663_s4] ss:$0 sm:$0xff] }
   0xc   :  { %262 = vmatpush1.bf16.msra.mxu0 %v478_v22  ;;  %452 = vmatpush3.bf16.msra.mxu1 %v479_v23  ;;  %v112_v4 = vld [vmem:[%s664_s2] sm:$0x7] }
   0xd   :  { %263 = vmatprep.subr.bf16.mxu0 %v480_v24  ;;  %453 = vmatprep.subr.bf16.mxu1 %v483_v26 }
  0x10   :  { %264 = vmatpush1.bf16.msra.mxu0 %v482_v25  ;;  %454 = vmatpush3.bf16.msra.mxu1 %v483_v26 }
  0x11   :  { %265 = vmatprep.subr.bf16.mxu0 %v484_v27  ;;  %455 = vmatprep.subr.bf16.mxu1 %v487_v29 }
  0x14   :  { %266 = vmatpush1.bf16.msra.mxu0 %v486_v28  ;;  %456 = vmatpush3.bf16.msra.mxu1 %v487_v29 }
  0x15   :  { %267 = vmatprep.subr.bf16.mxu0 %v488_v30  ;;  %457 = vmatprep.subr.bf16.mxu1 %v491_v31 }
  0x18   :  { %268 = vmatpush1.bf16.msra.mxu0 %v490_v32  ;;  %458 = vmatpush3.bf16.msra.mxu1 %v491_v31 }
  0x19   :  { %269 = vmatprep.subr.bf16.mxu0 %v492_v33  ;;  %459 = vmatprep.subr.bf16.mxu1 %v495_v34 }
  0x1c   :  { %270 = vmatpush1.bf16.msra.mxu0 %v494_v36  ;;  %460 = vmatpush3.bf16.msra.mxu1 %v495_v34 }
  0x1d   :  { %271 = vmatprep.subr.bf16.mxu0 %v496_v37  ;;  %461 = vmatprep.subr.bf16.mxu1 %v499_v38 }
  0x20   :  { %272 = vmatpush1.bf16.msra.mxu0 %v498_v39  ;;  %462 = vmatpush3.bf16.msra.mxu1 %v499_v38 }
  0x8f   :  { %v25_v7 = vpop.xlane.xlu0 %24  ;;  %v29_v8 = vpop.xlane.xlu1 %28 }
  0x90   :  { %v31_v9 = vmul.f32 0.0078125, %v25_v7  ;;  %v33_v10 = vmul.f32 0.0078125, %v29_v8 }
  0x92   :  { %v558_v11 = vsub.f32 %v21_v0, %v31_v9  ;;  %v560_v12 = vsub.f32 %v23_v1, %v33_v10  ;;  %v114_v1 = vlaneseq }
  0x93   :  { %v27_v13 = vpop.xlane.xlu0 %26 }
  0x94   :  { %v32_v14 = vmul.f32 0.0078125, %v27_v13  ;;  %v37_v15 = vmul.f32 %v558_v11, %v558_v11  ;;  %v39_v17 = vmul.f32 %v560_v12, %v560_v12 }
  0x96   :  { %v564_v16 = vsub.f32 %v22_v2, %v32_v14  ;;  %40 = vadd.xlane.f32.xlu1 %v37_v15  ;;  %v115_v2 = vshrl.u32 %v114_v1, 7 }
  0x98   :  { %v38_v18 = vmul.f32 %v564_v16, %v564_v16  ;;  %v116_v3 = vsub.s32 0, %v115_v2  ;;  %v120_v5 = vsub.s32 1, %v115_v2  ;;  %v124_v6 = vsub.s32 2, %v115_v2 }
  0x9a   :  { %44 = vadd.xlane.f32.xlu1 %v39_v17  ;;  %42 = vadd.xlane.f32.xlu0 %v38_v18  ;;  %v117_v7 = vrot.slane %v112_v4, %v116_v3  ;;  %v121_v8 = vrot.slane %v112_v4, %v120_v5  ;;  %v125_v9 = vrot.slane %v112_v4, %v124_v6 }
 0x123   :  { %v41_v40 = vpop.xlane.xlu1 %40 }
 0x124   :  { %v46_v41 = vmul.f32 0.0078125, %v41_v40 }
 0x126   :  { %v49_v42 = vadd.f32 1e-06, %v46_v41 }
 0x127   :  { %v45_v43 = vpop.xlane.xlu1 %44  ;;  %v43_v44 = vpop.xlane.xlu0 %42 }
 0x128   :  { %500 = vrsqrt.f32 %v49_v42  ;;  %v48_v45 = vmul.f32 0.0078125, %v45_v43  ;;  %v47_v46 = vmul.f32 0.0078125, %v43_v44 }
 0x12a   :  { %v51_v47 = vadd.f32 1e-06, %v48_v45  ;;  %v50_v48 = vadd.f32 1e-06, %v47_v46 }
 0x12c   :  { %502 = vrsqrt.f32 %v51_v47 }
 0x12d   :  { %504 = vrsqrt.f32 %v50_v48 }
 0x132   :  { %v501_v49 = vpop.eup %500 }
 0x133   :  { %v55_v50 = vmul.f32 %v501_v49, %v558_v11 }
 0x135   :  { %v65_v56 = vmul.f32 %v399_v51, %v55_v50 }
 0x136   :  { %v503_v52 = vpop.eup %502 }
 0x137   :  { %v505_v53 = vpop.eup %504  ;;  %v57_v54 = vmul.f32 %v503_v52, %v560_v12  ;;  %v75_v61 = vadd.f32 %v400_v57, %v65_v56 }
 0x138   :  { %v56_v55 = vmul.f32 %v505_v53, %v564_v16 }
 0x139   :  { %v67_v58 = vmul.f32 %v399_v51, %v57_v54 }
 0x13a   :  { %v66_v59 = vmul.f32 %v399_v51, %v56_v55 }
 0x13b   :  { %v77_v60 = vadd.f32 %v400_v57, %v67_v58 }
 0x13c   :  { %v76_v62 = vadd.f32 %v400_v57, %v66_v59 }
 0x13d   :  { %v79_v63 = vpack.c.bf16 %v77_v60, %v77_v60 }
 0x13e   :  { %v78_v0 = vpack.c.bf16 %v76_v62, %v75_v61 }
 0x140   :  { %290 = vmatmul.mubr.bf16.vlgmr.msra.gmra.mrb[0].mxu0 %v78_v0  ;;  %463 = vmatprep.mubr.bf16.mxu1 %v78_v0 }
 0x141   :  { %464 = vmatmul.mubr.bf16.vlgmr.msra.gmra.mrb[0].mxu1 %v79_v63  ;;  %299 = vmatprep.mubr.bf16.mxu0 %v506_v35 }
 0x148   :  { %300 = vmatmul.mubr.bf16.gmra.mrb[4].mxu0 %v79_v63 }
 0x213   :  { %v291_v10 = vpop.f32.mrb[0].mxu0 }
 0x214   :  { %v292_v11 = vadd.f32 %v291_v10, %v117_v7  ;;  %v293_v12 = vpop.f32.mrb[1].mxu0  ;;  %v465_v13 = vpop.f32.mrb[0].mxu1 }
 0x215   :  { %v294_v14 = vadd.f32 %v293_v12, %v121_v8  ;;  %v351_v15 = vadd.f32 %v465_v13, %v125_v9  ;;  %v295_v16 = vpop.f32.mrb[2].mxu0  ;;  %v342_v17 = vpop.f32.mrb[1].mxu1 }
 0x216   :  { %v296_v18 = vadd.f32 %v295_v16, %v117_v7  ;;  %v343_v19 = vadd.f32 %v342_v17, %v125_v9  ;;  %v297_v20 = vpop.f32.mrb[3].mxu0  ;;  %v466_v21 = vpop.f32.mrb[2].mxu1 }
 0x217   :  { %v431_v22 = vpack.c.bf16 %v294_v14, %v292_v11  ;;  %v436_v23 = vpack.c.bf16 %v351_v15, %v351_v15  ;;  %v298_v24 = vadd.f32 %v297_v20, %v121_v8  ;;  %v345_v25 = vpop.f32.mrb[3].mxu1 }
 0x218   :  { %v432_v26 = vpack.c.bf16 %v343_v19, %v343_v19  ;;  %v346_v27 = vadd.f32 %v345_v25, %v125_v9 }
 0x219   :  { %389 = vst [vmem:[%s665_s5] sm:$0xff] %v431_v22  ;;  %394 = vst [vmem:[%s665_s5 + $0x20] sm:$0xf] %v436_v23  ;;  %v433_v28 = vpack.c.bf16 %v298_v24, %v296_v18 }
 0x21a   :  { %390 = vst [vmem:[%s665_s5 + $0x8] sm:$0xf] %v432_v26  ;;  %v434_v29 = vpack.c.bf16 %v346_v27, %v346_v27 }
 0x21b   :  { %391 = vst [vmem:[%s665_s5 + $0xc] sm:$0xff] %v433_v28  ;;  %v301_v30 = vpop.f32.mrb[4].mxu0 }
 0x21c   :  { %392 = vst [vmem:[%s665_s5 + $0x14] sm:$0xf] %v434_v29  ;;  %v302_v31 = vadd.f32 %v301_v30, %v117_v7  ;;  %v303_v32 = vpop.f32.mrb[5].mxu0 }
 0x21d   :  { %v304_v33 = vadd.f32 %v303_v32, %v121_v8  ;;  %v305_v34 = vpop.f32.mrb[6].mxu0 }
 0x21e   :  { %v306_v35 = vpop.f32.mrb[7].mxu0 }
 0x21f   :  { %v435_v36 = vpack.c.bf16 %v304_v33, %v302_v31 }
 0x221   :  { %393 = vst [vmem:[%s665_s5 + $0x18] sm:$0xff] %v435_v36 }

// kernel: _lambda_.14
= control target key start
LH: loop header
LB: loop body
LE: loop exit
PB: predicated region body
PF: predicated region fallthrough
CT: control target
= control target key end

     0   :  { %s290_s1 = inlined_call_operand.vmem [shape: bf16[128,128], index: 1, kind: input, shape index: {}]   ;;  %s291_s0 = inlined_call_operand.vmem [shape: bf16[24,128], index: 0, kind: input, shape index: {}]   ;;  %s292_s2 = inlined_call_operand.vmem [shape: f32[1,128], index: 2, kind: input, shape index: {}]   ;;  %s293_s3 = inlined_call_operand.vmem [shape: f32[24,128], index: 3, kind: input, shape index: {}]   ;;  %s294_s4 = inlined_call_operand.vmem [shape: f32[24,128], index: 4, kind: output, shape index: {}]  }
   0x1   :  { %v204_v0 = vld [vmem:[%s290_s1] sm:$0xff]   ;;  %v205_v1 = vld [vmem:[%s290_s1 + $0x8] sm:$0xff]   ;;  %v206_v2 = vld [vmem:[%s290_s1 + $0x10] sm:$0xff]  }
   0x2   :  { %184 = vmatprep.subr.bf16.mxu0 %v204_v0  ;;  %v207_v3 = vld [vmem:[%s290_s1 + $0x18] sm:$0xff]   ;;  %v212_v4 = vld [vmem:[%s291_s0] sm:$0xff]   ;;  %v209_v6 = vld [vmem:[%s290_s1 + $0x28] sm:$0xff]  }
   0x3   :  { %185 = vmatpush3.bf16.msra.mxu0 %v204_v0  ;;  %200 = vmatprep.mubr.bf16.mxu0 %v212_v4  ;;  %v208_v5 = vld [vmem:[%s290_s1 + $0x20] sm:$0xff]   ;;  %v210_v7 = vld [vmem:[%s290_s1 + $0x30] sm:$0xff]   ;;  %v211_v8 = vld [vmem:[%s290_s1 + $0x38] sm:$0xff]  }
   0x4   :  { %186 = vmatprep.subr.bf16.mxu0 %v205_v1  ;;  %v213_v9 = vld [vmem:[%s291_s0 + $0x8] ss:$0 sps:$4 sm:$0xff]   ;;  %v163_v10 = vld [vmem:[%s292_s2] ss:$0 sm:$0xff]  ;;  %v152_v12 = vld [vmem:[%s293_s3 + $0x10] sm:$0xff] }
   0x5   :  { %v150_v15 = vld [vmem:[%s293_s3] sm:$0xff]  ;;  %v151_v20 = vld [vmem:[%s293_s3 + $0x8] sm:$0xff] }
   0x7   :  { %187 = vmatpush3.bf16.msra.mxu0 %v205_v1 }
   0x8   :  { %188 = vmatprep.subr.bf16.mxu0 %v206_v2 }
   0xb   :  { %189 = vmatpush3.bf16.msra.mxu0 %v206_v2 }
   0xc   :  { %190 = vmatprep.subr.bf16.mxu0 %v207_v3 }
   0xf   :  { %191 = vmatpush3.bf16.msra.mxu0 %v207_v3 }
  0x10   :  { %192 = vmatprep.subr.bf16.mxu0 %v208_v5 }
  0x13   :  { %193 = vmatpush3.bf16.msra.mxu0 %v208_v5 }
  0x14   :  { %194 = vmatprep.subr.bf16.mxu0 %v209_v6 }
  0x17   :  { %195 = vmatpush3.bf16.msra.mxu0 %v209_v6 }
  0x18   :  { %196 = vmatprep.subr.bf16.mxu0 %v210_v7 }
  0x1b   :  { %197 = vmatpush3.bf16.msra.mxu0 %v210_v7 }
  0x1c   :  { %198 = vmatprep.subr.bf16.mxu0 %v211_v8 }
  0x1f   :  { %199 = vmatpush3.bf16.msra.mxu0 %v211_v8 }
  0x22   :  { %201 = vmatmul.mubr.bf16.vlgmr.msra.gmra.mrb[0].mxu0 %v213_v9 }
  0xf5   :  { %v202_v11 = vpop.f32.mrb[0].mxu0 }
  0xf6   :  { %v145_v13 = vadd.f32 %v202_v11, %v163_v10  ;;  %v136_v14 = vpop.f32.mrb[1].mxu0 }
  0xf7   :  { %v137_v16 = vadd.f32 %v163_v10, %v136_v14  ;;  %v203_v17 = vpop.f32.mrb[2].mxu0 }
  0xf8   :  { %v155_v18 = vadd.f32 %v152_v12, %v145_v13  ;;  %v139_v19 = vpop.f32.mrb[3].mxu0 }
  0xf9   :  { %v153_v21 = vadd.f32 %v150_v15, %v137_v16  ;;  %v140_v22 = vadd.f32 %v163_v10, %v139_v19 }
  0xfa   :  { %158 = vst [vmem:[%s294_s4 + $0x10] sm:$0xff] %v155_v18 }
  0xfb   :  { %156 = vst [vmem:[%s294_s4] sm:$0xff] %v153_v21  ;;  %v154_v23 = vadd.f32 %v151_v20, %v140_v22 }
  0xfd   :  { %157 = vst [vmem:[%s294_s4 + $0x8] sm:$0xff] %v154_v23 }

// kernel: _lambda_.13
= control target key start
LH: loop header
LB: loop body
LE: loop exit
PB: predicated region body
PF: predicated region fallthrough
CT: control target
= control target key end

     0   :  { %s1332_s12 = smov 0   ;;  %s1334_s13 = smov 0   ;;  %s1505_s0 = inlined_call_operand.vmem [shape: bf16[2,10,384], index: 0, kind: input, shape index: {}, may-alias: {0,1,2}]   ;;  %s1506_s1 = inlined_call_operand.vmem [shape: bf16[2,10,384], index: 1, kind: input, shape index: {}, may-alias: {0,1,2}]   ;;  %s1507_s2 = inlined_call_operand.vmem [shape: bf16[2,10,384], index: 2, kind: input, shape index: {}, may-alias: {0,1,2}]   ;;  %s1508_s3 = inlined_call_operand.vmem [shape: bf16[2,10,128], index: 3, kind: output, shape index: {}]  }
   0x1   :  { %s1336_s14 = smov 0   ;;  %s1338_s15 = smov 0  }
   0x2   :  { %s1340_s16 = smov 0  }
   0x3 LB: > { %s25_s17 = sadd.s32 1, %s1301_s15  ;;  %p41_p1 = scmp.ne.s32.totalorder %s1293_s13, %s1289_s12  ;;  %s1305_s16 = sphi %s1340_s16, %s13_s16   ;;  %s1301_s15 = sphi %s1338_s15, %s1513_s15   ;;  %s1297_s14 = sphi %s1336_s14, %s1512_s14   ;;  %s1293_s13 = sphi %s1334_s13, %s1511_s13   ;;  %s1289_s12 = sphi %s1332_s12, %s1510_s12  }
   0x4   : > { %p27_p0 = scmp.ge.s32.totalorder %s25_s17, 2  ;;  %p42_p2 = scmp.eq.s32.totalorder %s1305_s16, 0 }
   0x5   : > { %s34_s20 = sadd.s32 1, %s1293_s13  ;;  %p1073_p5 = scmp.ge.s32.totalorder %s1305_s16, 2 }
   0x6   : > { %s1515_s17 = smov (%p27_p0, %s25_s17), 0  ;;  %p1363_p3 = por %p42_p2, %p41_p1 }
   0x7   : > { %s29_s19 = ssub.s32 %s1301_s15, %s1515_s17  ;;  %155 = sbr.rel (%p1073_p5) target bundleno = 35 (0x23), region = 16 }
   0x8   : > { %p32_p4 = scmp.eq.s32.totalorder %s29_s19, 0 }
   0xa   : > { %s1371_s21 = scalar_select %p32_p4, %s1293_s13, %s34_s20  }
   0xe   : > { %158 = sbr.rel (!%p1363_p3) target bundleno = 21 (0x15), region = 20  ;;  %s160_s22 = sand.u32 (%p1363_p3), 1, %s1293_s13  }
   0xf   : > { %s1172_s23 = smul.u32 (%p1363_p3), 24, %s1301_s15  ;;  %s1074_s24 = sshll.u32 (%p1363_p3), %s160_s22, 3 }
  0x10   : > { %s162_s28 = scalar_lea.vmem (%p1363_p3), [#allocation2], %s1074_s24 }
  0x11   : > { %s166_s27 = scalar_lea.vmem (%p1363_p3), %s1505_s0, %s1172_s23 }
  0x12   : > { %v182_v0 = vld [vmem:[%s166_s27] sm:$0xf] (%p1363_p3)  ;;  %v184_v1 = vld [vmem:[%s166_s27 + $0xc] sm:$0xf] (%p1363_p3) }
  0x13   : > { %183 = vst [vmem:[%s162_s28] sm:$0xf] (%p1363_p3), %v182_v0  ;;  %185 = vst [vmem:[%s162_s28 + $0x4] sm:$0xf] (%p1363_p3), %v184_v1 }
  0x15 PF: > { %212 = sbr.rel (!%p1363_p3) target bundleno = 28 (0x1c), region = 61  ;;  %s214_s29 = sand.u32 (%p1363_p3), 1, %s1293_s13  }
  0x16   : > { %s1077_s30 = smul.u32 (%p1363_p3), 24, %s1301_s15  ;;  %s1076_s4 = sshll.u32 (%p1363_p3), %s214_s29, 3 }
  0x17   : > { %s216_s8 = scalar_lea.vmem (%p1363_p3), [#allocation3], %s1076_s4 }
  0x18   : > { %s981_s7 = scalar_lea.vmem (%p1363_p3), %s1506_s1, %s1077_s30 }
  0x19   : > { %v1078_v2 = vld [vmem:[%s981_s7 + $0x4] sm:$0xf] (%p1363_p3)  ;;  %v1079_v3 = vld [vmem:[%s981_s7 + $0x10] sm:$0xf] (%p1363_p3) }
  0x1a   : > { %238 = vst [vmem:[%s216_s8] sm:$0xf] (%p1363_p3), %v1078_v2  ;;  %240 = vst [vmem:[%s216_s8 + $0x4] sm:$0xf] (%p1363_p3), %v1079_v3 }
  0x1c PF: > { %267 = sbr.rel (!%p1363_p3) target bundleno = 35 (0x23), region = 102  ;;  %s269_s9 = sand.u32 (%p1363_p3), 1, %s1293_s13  }
  0x1d   : > { %s1081_s10 = smul.u32 (%p1363_p3), 24, %s1301_s15  ;;  %s1080_s11 = sshll.u32 (%p1363_p3), %s269_s9, 3 }
  0x1e   : > { %s271_s23 = scalar_lea.vmem (%p1363_p3), [#allocation4], %s1080_s11 }
  0x1f   : > { %s988_s22 = scalar_lea.vmem (%p1363_p3), %s1507_s2, %s1081_s10 }
  0x20   : > { %v1082_v4 = vld [vmem:[%s988_s22 + $0x8] sm:$0xf] (%p1363_p3)  ;;  %v1083_v5 = vld [vmem:[%s988_s22 + $0x14] sm:$0xf] (%p1363_p3) }
  0x21   : > { %293 = vst [vmem:[%s271_s23] sm:$0xf] (%p1363_p3), %v1082_v4  ;;  %295 = vst [vmem:[%s271_s23 + $0x4] sm:$0xf] (%p1363_p3), %v1083_v5 }
  0x23 PF: > { %p1084_p6 = scmp.ge.s32.totalorder %s1305_s16, 1  ;;  %p321_p7 = scmp.lt.s32.totalorder %s1305_s16, 3 }
  0x25   : > { %p322_p8 = pnand %p1084_p6, %p321_p7 }
  0x26   : > { %s328_s18 = sand.u32 (!%p322_p8), 1, %s1289_s12   ;;  %v1307_v6 = vmov (!%p322_p8), 0.0   ;;  %vm1308_vm0 = vmmov (!%p322_p8), 0   ;;  %vm406_vm1 = vcmask (!%p322_p8), 261120   ;;  %vm454_vm2 = vcmask (!%p322_p8), 80896   ;;  %s1309_s26 = smov (!%p322_p8), 96  }
  0x27   : > { %325 = sbr.rel (%p322_p8) target bundleno = 1520 (0x5f0), region = 143  ;;  %1124 = vmatprep.subr.bf16.mxu0 (!%p322_p8), %v1307_v6  ;;  %s1399_s24 = sshll.u32 (!%p322_p8), %s328_s18, 3  ;;  %1126 = vmatprep.mubr.msk.bf16.mxu0 (!%p322_p8), %vm1308_vm0, %v1307_v6  ;;  %vm458_vm3 = vcmask (!%p322_p8), 74752   ;;  %vm487_vm4 = vcmask (!%p322_p8), 1044480   ;;  %vm927_vm5 = vcmask (!%p322_p8), 523264   ;;  %vm930_vm6 = vcmask (!%p322_p8), 785408  }
  0x28   : > { %1130 = vmatprep.subr.bf16.mxu1 (!%p322_p8), %v1307_v6  ;;  %1132 = vmatprep.mubr.msk.bf16.mxu1 (!%p322_p8), %vm1308_vm0, %v1307_v6  ;;  %s337_s25 = scalar_lea.vmem (!%p322_p8), [#allocation3], %s1399_s24  ;;  %s330_s12 = scalar_lea.vmem (!%p322_p8), [#allocation2], %s1399_s24 }
  0x29   : > { %v1233_v7 = vld [vmem:[%s337_s25] sm:$0x1f] (!%p322_p8)   ;;  %v388_v8 = vld [vmem:[%s330_s12] sm:$0xf] (!%p322_p8)  ;;  %v389_v9 = vld [vmem:[%s330_s12 + $0x4] sm:$0x1] (!%p322_p8) }
  0x2a   : > { %v411_v10 = vsel (!%p322_p8), %vm406_vm1, %v1233_v7, 0  ;;  %v390_v11 = vmul.bf16 (!%p322_p8), 1043676725, %v388_v8  ;;  %v391_v12 = vmul.bf16 (!%p322_p8), 1043676725, %v389_v9  ;;  %s1310_s27 = smov (!%p322_p8), 32  }
  0x2b   : > { %1125 = vmatpush3.bf16.xpose.msra.mxu0 (!%p322_p8), %v411_v10  ;;  %s344_s28 = scalar_lea.vmem (!%p322_p8), [#allocation4], %s1399_s24  ;;  %s1311_s29 = smov (!%p322_p8), 64  }
  0x2c   : > { %1142 = vmatprep.subr.bf16.mxu0 (!%p322_p8), %v1307_v6  ;;  %v1090_v13 = vcombine.low (!%p322_p8), %v390_v11, %v391_v12  ;;  %v1420_v30 = vld [vmem:[%s344_s28] sm:$0x1f] (!%p322_p8)   ;;  %p378_p9 = scmp.lt.s32.totalorder (!%p322_p8), %s1297_s14, 1 }
  0x2d   : > { %v489_v31 = vsel (!%p322_p8), %vm487_vm4, %v1420_v30, 0 }
  0x2e   : > { %1131 = vmatpush3.bf16.msra.mxu1 %v489_v31  ;;  %s1517_s14 = smov (!%p378_p9, %s1297_s14), 1 }
  0x2f   : > { %1136 = vmatprep.subr.bf16.mxu1 %v1307_v6  ;;  %s1105_s30 = sshll.u32 %s1517_s14, 3 }
  0x30   : > { %s385_s6 = scalar_lea.vmem %s1508_s3, %s1105_s30 }
  0x32   : > { %1127 = vmatmul.mubr.msk.bf16.vlgmr.msra.gmra.mrb[0].mxu0 %vm406_vm1, %v1090_v13 }
  0x33   : > { %1144 = vmatprep.mubr.msk.bf16.mxu0 %vm1308_vm0, %v1307_v6 }
 0x105   : > { %v447_v14 = vpop.f32.mrb[0].mxu0 }
 0x106   : > { %v1128_v15 = vpop.f32.mrb[1].mxu0  ;;  %v455_v16 = vsel %vm454_vm2, %v447_v14, -inf }
 0x107   : > { %456 = vmax.xlane.f32.xlu0 %v455_v16  ;;  %v450_v17 = vpop.f32.mrb[2].mxu0 }
 0x108   : > { %v1129_v18 = vpop.f32.mrb[3].mxu0  ;;  %v459_v19 = vsel %vm458_vm3, %v450_v17, -inf }
 0x10b   : > { %460 = vmax.xlane.f32.xlu0 %v459_v19 }
 0x121   : > { %534 = vrot.lane.b32.xlu0 %v1233_v7, %s1309_s26 }
 0x125   : > { %780 = vrot.lane.b32.xlu0 %v1233_v7, %s1310_s27 }
 0x194   : > { %v457_v20 = vpop.xlane.xlu0 %456 }
 0x195   : > { %v462_v21 = vsub.f32 %v447_v14, %v457_v20 }
 0x197   : > { %v464_v22 = vmul.f32 1.442695, %v462_v21 }
 0x198   : > { %v461_v23 = vpop.xlane.xlu0 %460 }
 0x199   : > { %1235 = vpow2.f32 %v464_v22  ;;  %v463_v24 = vsub.f32 %v450_v17, %v461_v23 }
 0x19b   : > { %v466_v25 = vmul.f32 1.442695, %v463_v24 }
 0x19c   : > { %v535_v36 = vpop.permute.xlu0 %534 }
 0x19d   : > { %1237 = vpow2.f32 %v466_v25  ;;  %v540_v40 = vsel %vm406_vm1, %v535_v36, 0 }
 0x1a0   : > { %v781_v44 = vpop.permute.xlu0 %780 }
 0x1a1   : > { %v786_v46 = vsel %vm406_vm1, %v781_v44, 0 }
 0x1a3   : > { %v1236_v26 = vpop.eup %1235 }
 0x1a4   : > { %v468_v27 = vsel %vm454_vm2, %v1236_v26, 0.0 }
 0x1a5   : > { %469 = vadd.xlane.f32.xlu1 %v468_v27 }
 0x1a7   : > { %v1238_v28 = vpop.eup %1237 }
 0x1a8   : > { %v471_v29 = vsel %vm458_vm3, %v1238_v28, 0.0 }
 0x1a9   : > { %472 = vadd.xlane.f32.xlu1 %v471_v29 }
 0x1ba   : > { %532 = vrot.lane.b32.xlu1 %v1090_v13, %s1309_s26 }
 0x1be   : > { %657 = vrot.lane.b32.xlu1 %v1233_v7, %s1311_s29 }
 0x1c2   : > { %655 = vrot.lane.b32.xlu1 %v1090_v13, %s1311_s29 }
 0x1c6   : > { %778 = vrot.lane.b32.xlu1 %v1090_v13, %s1310_s27 }
 0x232   : > { %v470_v32 = vpop.xlane.xlu1 %469 }
 0x233   : > { %1239 = vrcp.f32 %v470_v32 }
 0x236   : > { %v473_v33 = vpop.xlane.xlu1 %472 }
 0x237   : > { %1241 = vrcp.f32 %v473_v33 }
 0x23a   : > { %v533_v39 = vpop.permute.xlu1 %532 }
 0x23d   : > { %v1240_v34 = vpop.eup %1239 }
 0x23e   : > { %v476_v37 = vmul.f32 %v1240_v34, %v1236_v26  ;;  %v658_v42 = vpop.permute.xlu1 %657 }
 0x23f   : > { %v663_v43 = vsel %vm406_vm1, %v658_v42, 0 }
 0x241   : > { %v1242_v35 = vpop.eup %1241 }
 0x242   : > { %v477_v38 = vmul.f32 %v1242_v35, %v1238_v28  ;;  %v656_v45 = vpop.permute.xlu1 %655 }
 0x244   : > { %v478_v41 = vpack.c.bf16 %v477_v38, %v476_v37 }
 0x246   : > { %1133 = vmatmul.mubr.msk.bf16.vlgmr.msra.gmra.mrb[0].mxu1 %vm454_vm2, %v478_v41  ;;  %v779_v47 = vpop.permute.xlu1 %778 }
 0x247   : > { %1137 = vmatpush3.bf16.xpose.msra.mxu1 %v540_v40  ;;  %1138 = vmatprep.mubr.msk.bf16.mxu1 %vm1308_vm0, %v1307_v6 }
 0x248   : > { %1148 = vmatprep.subr.bf16.mxu1 %v1307_v6 }
 0x24e   : > { %1139 = vmatmul.mubr.msk.bf16.vlgmr.msra.gmra.mrb[4].mxu1 %vm406_vm1, %v533_v39 }
 0x24f   : > { %1149 = vmatpush3.bf16.xpose.msra.mxu1 %v663_v43  ;;  %1150 = vmatprep.mubr.msk.bf16.mxu1 %vm1308_vm0, %v1307_v6 }
 0x250   : > { %1160 = vmatprep.subr.bf16.mxu1 %v1307_v6 }
 0x256   : > { %1151 = vmatmul.mubr.msk.bf16.vlgmr.msra.gmra.mrb[8].mxu1 %vm406_vm1, %v656_v45 }
 0x257   : > { %1161 = vmatpush3.bf16.xpose.msra.mxu1 %v786_v46  ;;  %1162 = vmatprep.mubr.msk.bf16.mxu1 %vm1308_vm0, %v1307_v6 }
 0x25e   : > { %1163 = vmatmul.mubr.msk.bf16.vlgmr.msra.gmra.mrb[12].mxu1 %vm406_vm1, %v779_v47 }
 0x319   : > { %v1444_v48 = vpop.f32.mrb[0].mxu1 }
 0x31a   : > { %v1134_v49 = vpop.f32.mrb[1].mxu1 }
 0x31b   : > { %v1446_v50 = vpop.f32.mrb[2].mxu1 }
 0x31c   : > { %v1135_v51 = vpop.f32.mrb[3].mxu1 }
 0x321   : > { %v576_v52 = vpop.f32.mrb[4].mxu1 }
 0x322   : > { %v1140_v53 = vpop.f32.mrb[5].mxu1  ;;  %v583_v54 = vsel %vm454_vm2, %v576_v52, -inf }
 0x323   : > { %584 = vmax.xlane.f32.xlu0 %v583_v54  ;;  %v579_v55 = vpop.f32.mrb[6].mxu1 }
 0x324   : > { %v1141_v56 = vpop.f32.mrb[7].mxu1  ;;  %v586_v57 = vsel %vm458_vm3, %v579_v55, -inf }
 0x325   : > { %587 = vmax.xlane.f32.xlu1 %v586_v57 }
 0x329   : > { %v699_v58 = vpop.f32.mrb[8].mxu1 }
 0x32a   : > { %v1152_v59 = vpop.f32.mrb[9].mxu1  ;;  %v706_v60 = vsel %vm454_vm2, %v699_v58, -inf }
 0x32b   : > { %707 = vmax.xlane.f32.xlu0 %v706_v60  ;;  %v702_v61 = vpop.f32.mrb[10].mxu1 }
 0x32c   : > { %v1153_v62 = vpop.f32.mrb[11].mxu1  ;;  %v709_v63 = vsel %vm458_vm3, %v702_v61, -inf }
 0x32f   : > { %710 = vmax.xlane.f32.xlu0 %v709_v63 }
 0x331   : > { %v822_v0 = vpop.f32.mrb[12].mxu1 }
 0x332   : > { %v1164_v1 = vpop.f32.mrb[13].mxu1  ;;  %v829_v2 = vsel %vm454_vm2, %v822_v0, -inf }
 0x333   : > { %830 = vmax.xlane.f32.xlu0 %v829_v2  ;;  %v825_v3 = vpop.f32.mrb[14].mxu1 }
 0x334   : > { %v832_v4 = vsel %vm458_vm3, %v825_v3, -inf  ;;  %v1165_v5 = vpop.f32.mrb[15].mxu1 }
 0x335   : > { %833 = vmax.xlane.f32.xlu1 %v832_v4 }
 0x3b0   : > { %v585_v7 = vpop.xlane.xlu0 %584 }
 0x3b1   : > { %v589_v8 = vsub.f32 %v576_v52, %v585_v7 }
 0x3b2   : > { %v588_v9 = vpop.xlane.xlu1 %587 }
 0x3b3   : > { %v591_v10 = vmul.f32 1.442695, %v589_v8  ;;  %v590_v11 = vsub.f32 %v579_v55, %v588_v9 }
 0x3b5   : > { %1243 = vpow2.f32 %v591_v10  ;;  %v593_v12 = vmul.f32 1.442695, %v590_v11 }
 0x3b7   : > { %1245 = vpow2.f32 %v593_v12 }
 0x3b8   : > { %v708_v13 = vpop.xlane.xlu0 %707 }
 0x3b9   : > { %v712_v14 = vsub.f32 %v699_v58, %v708_v13 }
 0x3bb   : > { %v714_v15 = vmul.f32 1.442695, %v712_v14 }
 0x3bc   : > { %v711_v16 = vpop.xlane.xlu0 %710 }
 0x3bd   : > { %1247 = vpow2.f32 %v714_v15  ;;  %v713_v17 = vsub.f32 %v702_v61, %v711_v16 }
 0x3bf   : > { %v1244_v18 = vpop.eup %1243  ;;  %v716_v19 = vmul.f32 1.442695, %v713_v17 }
 0x3c0   : > { %v831_v20 = vpop.xlane.xlu0 %830  ;;  %v595_v21 = vsel %vm454_vm2, %v1244_v18, 0.0 }
 0x3c1   : > { %v1246_v22 = vpop.eup %1245  ;;  %1249 = vpow2.f32 %v716_v19  ;;  %v835_v23 = vsub.f32 %v822_v0, %v831_v20  ;;  %596 = vadd.xlane.f32.xlu0 %v595_v21 }
 0x3c2   : > { %v598_v24 = vsel %vm458_vm3, %v1246_v22, 0.0  ;;  %v834_v33 = vpop.xlane.xlu1 %833 }
 0x3c3   : > { %v837_v25 = vmul.f32 1.442695, %v835_v23  ;;  %599 = vadd.xlane.f32.xlu1 %v598_v24  ;;  %v836_v34 = vsub.f32 %v825_v3, %v834_v33 }
 0x3c5   : > { %1251 = vpow2.f32 %v837_v25  ;;  %v839_v35 = vmul.f32 1.442695, %v836_v34 }
 0x3c7   : > { %v1248_v26 = vpop.eup %1247  ;;  %1253 = vpow2.f32 %v839_v35 }
 0x3c8   : > { %v718_v27 = vsel %vm454_vm2, %v1248_v26, 0.0 }
 0x3c9   : > { %719 = vadd.xlane.f32.xlu0 %v718_v27 }
 0x3cb   : > { %v1250_v28 = vpop.eup %1249 }
 0x3cc   : > { %v721_v29 = vsel %vm458_vm3, %v1250_v28, 0.0 }
 0x3cd   : > { %722 = vadd.xlane.f32.xlu1 %v721_v29 }
 0x3cf   : > { %v1252_v31 = vpop.eup %1251 }
 0x3d0   : > { %v841_v32 = vsel %vm454_vm2, %v1252_v31, 0.0 }
 0x3d1   : > { %842 = vadd.xlane.f32.xlu0 %v841_v32  ;;  %v1254_v36 = vpop.eup %1253 }
 0x3d2   : > { %v844_v37 = vsel %vm458_vm3, %v1254_v36, 0.0 }
 0x3de   : > { %729 = vrot.lane.b32.xlu1 %v1420_v30, %s1311_s29 }
 0x3e7   : > { %606 = vrot.lane.b32.xlu0 %v1420_v30, %s1309_s26 }
 0x402   : > { %845 = vadd.xlane.f32.xlu1 %v844_v37 }
 0x413   : > { %852 = vrot.lane.b32.xlu1 %v1420_v30, %s1310_s27 }
 0x44e   : > { %v597_v39 = vpop.xlane.xlu0 %596 }
 0x450   : > { %v600_v38 = vpop.xlane.xlu1 %599 }
 0x451   : > { %1255 = vrcp.f32 %v600_v38 }
 0x452   : > { %1257 = vrcp.f32 %v597_v39 }
 0x456   : > { %v720_v40 = vpop.xlane.xlu0 %719 }
 0x45a   : > { %v723_v41 = vpop.xlane.xlu1 %722 }
 0x45b   : > { %1259 = vrcp.f32 %v723_v41  ;;  %v1256_v42 = vpop.eup %1255 }
 0x45c   : > { %1261 = vrcp.f32 %v720_v40  ;;  %v1258_v44 = vpop.eup %1257  ;;  %v604_v45 = vmul.f32 %v1256_v42, %v1246_v22 }
 0x45d   : > { %v603_v47 = vmul.f32 %v1258_v44, %v1244_v18 }
 0x45e   : > { %v843_v43 = vpop.xlane.xlu0 %842  ;;  %v730_v51 = vpop.permute.xlu1 %729 }
 0x45f   : > { %v605_v52 = vpack.c.bf16 %v604_v45, %v603_v47  ;;  %v735_v53 = vsel %vm487_vm4, %v730_v51, 0  ;;  %1263 = vrcp.f32 %v843_v43 }
 0x462   : > { %v607_v46 = vpop.permute.xlu0 %606 }
 0x463   : > { %v612_v49 = vsel %vm487_vm4, %v607_v46, 0 }
 0x464   : > { %1143 = vmatpush3.bf16.msra.mxu0 %v612_v49 }
 0x465   : > { %1154 = vmatprep.subr.bf16.mxu0 %v1307_v6  ;;  %v1260_v30 = vpop.eup %1259 }
 0x466   : > { %v1262_v54 = vpop.eup %1261  ;;  %v727_v55 = vmul.f32 %v1260_v30, %v1250_v28 }
 0x467   : > { %1145 = vmatmul.mubr.msk.bf16.vlgmr.msra.gmra.mrb[4].mxu0 %vm454_vm2, %v605_v52  ;;  %v726_v56 = vmul.f32 %v1262_v54, %v1248_v26 }
 0x468   : > { %1155 = vmatpush3.bf16.msra.mxu0 %v735_v53  ;;  %1156 = vmatprep.mubr.msk.bf16.mxu0 %vm1308_vm0, %v1307_v6 }
 0x469   : > { %1166 = vmatprep.subr.bf16.mxu0 %v1307_v6  ;;  %v728_v57 = vpack.c.bf16 %v727_v55, %v726_v56  ;;  %v1264_v61 = vpop.eup %1263 }
 0x46a   : > { %v849_v63 = vmul.f32 %v1264_v61, %v1252_v31 }
 0x46f   : > { %1157 = vmatmul.mubr.msk.bf16.vlgmr.msra.gmra.mrb[8].mxu0 %vm454_vm2, %v728_v57 }
 0x470   : > { %1168 = vmatprep.mubr.msk.bf16.mxu0 %vm1308_vm0, %v1307_v6 }
 0x48f   : > { %v846_v58 = vpop.xlane.xlu1 %845 }
 0x490   : > { %1265 = vrcp.f32 %v846_v58 }
 0x493   : > { %v853_v59 = vpop.permute.xlu1 %852 }
 0x494   : > { %v858_v60 = vsel %vm487_vm4, %v853_v59, 0 }
 0x495   : > { %1167 = vmatpush3.bf16.msra.mxu0 %v858_v60 }
 0x49a   : > { %v1266_v62 = vpop.eup %1265 }
 0x49b   : > { %v850_v0 = vmul.f32 %v1266_v62, %v1254_v36 }
 0x49d   : > { %v851_v1 = vpack.c.bf16 %v850_v0, %v849_v63 }
 0x49f   : > { %1169 = vmatmul.mubr.msk.bf16.vlgmr.msra.gmra.mrb[12].mxu0 %vm454_vm2, %v851_v1 }
 0x53a   : > { %v648_v2 = vpop.f32.mrb[4].mxu0 }
 0x53b   : > { %v1146_v3 = vpop.f32.mrb[5].mxu0 }
 0x53c   : > { %v651_v4 = vpop.f32.mrb[6].mxu0 }
 0x53d   : > { %v1218_v5 = vpack.i.bf16 %v651_v4, %v648_v2  ;;  %v1147_v6 = vpop.f32.mrb[7].mxu0 }
 0x53f   : > { %1219 = vrot.lane.b32.xlu1 %v1218_v5, %s1310_s27 }
 0x542   : > { %v771_v7 = vpop.f32.mrb[8].mxu0 }
 0x543   : > { %v1158_v8 = vpop.f32.mrb[9].mxu0 }
 0x544   : > { %v774_v9 = vpop.f32.mrb[10].mxu0 }
 0x545   : > { %v1223_v10 = vpack.i.bf16 %v774_v9, %v771_v7  ;;  %v1159_v11 = vpop.f32.mrb[11].mxu0 }
 0x547   : > { %1224 = vrot.lane.b32.xlu0 %v1223_v10, %s1311_s29 }
 0x572   : > { %v894_v12 = vpop.f32.mrb[12].mxu0 }
 0x573   : > { %v1170_v13 = vpop.f32.mrb[13].mxu0 }
 0x574   : > { %v897_v14 = vpop.f32.mrb[14].mxu0 }
 0x575   : > { %v1228_v15 = vpack.i.bf16 %v897_v14, %v894_v12  ;;  %v1171_v16 = vpop.f32.mrb[15].mxu0 }
 0x577   : > { %1229 = vrot.lane.b32.xlu1 %v1228_v15, %s1309_s26 }
 0x5b1   : > { %v1220_v17 = vpop.permute.xlu1 %1219 }
 0x5b2   : > { %v1222_v19 = vunpack.i.h.bf16 %v1220_v17  ;;  %v1221_v20 = vunpack.i.l.bf16 %v1220_v17 }
 0x5b4   : > { %v926_v24 = vsel %vm406_vm1, %v1446_v50, %v1222_v19  ;;  %v925_v25 = vsel %vm406_vm1, %v1444_v48, %v1221_v20 }
 0x5b9   : > { %v1225_v18 = vpop.permute.xlu0 %1224 }
 0x5ba   : > { %v1227_v21 = vunpack.i.h.bf16 %v1225_v18  ;;  %v1226_v22 = vunpack.i.l.bf16 %v1225_v18 }
 0x5bc   : > { %v929_v28 = vsel %vm927_vm5, %v926_v24, %v1227_v21  ;;  %v928_v29 = vsel %vm927_vm5, %v925_v25, %v1226_v22 }
 0x5e9   : > { %v1230_v23 = vpop.permute.xlu1 %1229 }
 0x5ea   : > { %v1232_v26 = vunpack.i.h.bf16 %v1230_v23  ;;  %v1231_v27 = vunpack.i.l.bf16 %v1230_v23 }
 0x5ec   : > { %v932_v31 = vsel %vm930_vm6, %v929_v28, %v1232_v26  ;;  %v931_v32 = vsel %vm930_vm6, %v928_v29, %v1231_v27 }
 0x5ed   : > { %v1107_v33 = vpack.c.bf16 %v932_v31, %v932_v31  ;;  %v1106_v34 = vpack.c.bf16 %v931_v32, %v931_v32 }
 0x5ef   : > { %942 = vst [vmem:[%s385_s6 + $0x4] sm:$0x1] %v1107_v33  ;;  %941 = vst [vmem:[%s385_s6] sm:$0xf] %v1106_v34 }
 0x5f0 PF: > { %s13_s16 = sadd.s32 1, %s1305_s16   ;;  %s1510_s12 = smov %s1293_s13 }
 0x5f1   : > { %p10_p10 = scmp.ge.s32.totalorder %s13_s16, 4   ;;  %s1511_s13 = smov %s1371_s21 }
 0x5f2   : > { %s1512_s14 = smov %s1301_s15  ;;  %s1513_s15 = smov %s1515_s17 }
 0x5f3   :  { %12 = sbr.rel (!%p10_p10) target bundleno = 3 (0x3), region = 206 }

// kernel: _lambda_.16
= control target key start
LH: loop header
LB: loop body
LE: loop exit
PB: predicated region body
PF: predicated region fallthrough
CT: control target
= control target key end

     0   :  { %s729_s1 = inlined_call_operand.vmem [shape: bf16[512,128], index: 1, kind: input, shape index: {}]   ;;  %s730_s0 = inlined_call_operand.vmem [shape: bf16[24,512], index: 0, kind: input, shape index: {}]   ;;  %s731_s2 = inlined_call_operand.vmem [shape: f32[1,128], index: 2, kind: input, shape index: {}]   ;;  %s732_s3 = inlined_call_operand.vmem [shape: f32[24,128], index: 3, kind: input, shape index: {}]   ;;  %s733_s4 = inlined_call_operand.vmem [shape: f32[24,128], index: 4, kind: output, shape index: {}]  }
   0x1   :  { %v527_v0 = vld [vmem:[%s729_s1 + $0x40] sm:$0xff]   ;;  %v531_v4 = vld [vmem:[%s729_s1 + $0x48] sm:$0xff]   ;;  %v535_v8 = vld [vmem:[%s729_s1 + $0x50] sm:$0xff]  }
   0x2   :  { %v528_v1 = vld [vmem:[%s729_s1 + $0xc0] sm:$0xff]   ;;  %471 = vmatprep.subr.bf16.mxu0 %v527_v0  ;;  %v532_v5 = vld [vmem:[%s729_s1 + $0xc8] sm:$0xff]   ;;  %v536_v9 = vld [vmem:[%s729_s1 + $0xd0] sm:$0xff]  }
   0x3   :  { %v529_v2 = vld [vmem:[%s729_s1] sm:$0xff]   ;;  %499 = vmatprep.subr.bf16.mxu1 %v528_v1  ;;  %v533_v6 = vld [vmem:[%s729_s1 + $0x8] sm:$0xff]   ;;  %v537_v10 = vld [vmem:[%s729_s1 + $0x10] sm:$0xff]  }
   0x4   :  { %v530_v3 = vld [vmem:[%s729_s1 + $0x80] sm:$0xff]   ;;  %472 = vmatpush3.bf16.msra.mxu0 %v529_v2  ;;  %v534_v7 = vld [vmem:[%s729_s1 + $0x88] sm:$0xff]   ;;  %v538_v11 = vld [vmem:[%s729_s1 + $0x90] sm:$0xff]  }
   0x5   :  { %500 = vmatpush3.bf16.msra.mxu1 %v530_v3  ;;  %473 = vmatprep.subr.bf16.mxu0 %v531_v4  ;;  %v539_v12 = vld [vmem:[%s729_s1 + $0x58] sm:$0xff]   ;;  %v543_v16 = vld [vmem:[%s729_s1 + $0x60] sm:$0xff]   ;;  %v547_v20 = vld [vmem:[%s729_s1 + $0x68] sm:$0xff]  }
   0x6   :  { %501 = vmatprep.subr.bf16.mxu1 %v532_v5  ;;  %v540_v13 = vld [vmem:[%s729_s1 + $0xd8] sm:$0xff]   ;;  %v544_v17 = vld [vmem:[%s729_s1 + $0xe0] sm:$0xff]   ;;  %v548_v21 = vld [vmem:[%s729_s1 + $0xe8] sm:$0xff]  }
   0x7   :  { %v541_v14 = vld [vmem:[%s729_s1 + $0x18] sm:$0xff]   ;;  %v545_v18 = vld [vmem:[%s729_s1 + $0x20] sm:$0xff]   ;;  %v549_v22 = vld [vmem:[%s729_s1 + $0x28] sm:$0xff]  }
   0x8   :  { %474 = vmatpush3.bf16.msra.mxu0 %v533_v6  ;;  %v542_v15 = vld [vmem:[%s729_s1 + $0x98] sm:$0xff]   ;;  %v546_v19 = vld [vmem:[%s729_s1 + $0xa0] sm:$0xff]   ;;  %v550_v23 = vld [vmem:[%s729_s1 + $0xa8] sm:$0xff]  }
   0x9   :  { %502 = vmatpush3.bf16.msra.mxu1 %v534_v7  ;;  %475 = vmatprep.subr.bf16.mxu0 %v535_v8  ;;  %v551_v24 = vld [vmem:[%s729_s1 + $0x70] sm:$0xff]   ;;  %v555_v28 = vld [vmem:[%s729_s1 + $0x78] sm:$0xff]   ;;  %v22_v36 = vld [vmem:[%s730_s0 + $0x20] sm:$0xff] }
   0xa   :  { %503 = vmatprep.subr.bf16.mxu1 %v536_v9  ;;  %v552_v25 = vld [vmem:[%s729_s1 + $0xf0] sm:$0xff]   ;;  %v556_v29 = vld [vmem:[%s729_s1 + $0xf8] sm:$0xff]   ;;  %v436_v37 = vcombine.high %v22_v36, %v22_v36  ;;  %v23_v38 = vld [vmem:[%s730_s0 + $0x28] sm:$0xff]  ;;  %v435_v40 = vcombine.low %v22_v36, %v22_v36 }
   0xb   :  { %v553_v26 = vld [vmem:[%s729_s1 + $0x30] sm:$0xff]   ;;  %v557_v30 = vld [vmem:[%s729_s1 + $0x38] sm:$0xff]   ;;  %v438_v39 = vcombine.high %v23_v38, %v23_v38  ;;  %v437_v41 = vcombine.low %v23_v38, %v23_v38  ;;  %v430_v44 = vld [vmem:[%s731_s2] ss:$0 sm:$0xff] }
   0xc   :  { %476 = vmatpush3.bf16.msra.mxu0 %v537_v10  ;;  %v554_v27 = vld [vmem:[%s729_s1 + $0xb0] sm:$0xff]   ;;  %v558_v31 = vld [vmem:[%s729_s1 + $0xb8] sm:$0xff]   ;;  %v417_v55 = vld [vmem:[%s732_s3] sm:$0xff] }
   0xd   :  { %504 = vmatpush3.bf16.msra.mxu1 %v538_v11  ;;  %477 = vmatprep.subr.bf16.mxu0 %v539_v12  ;;  %v559_v32 = vld [vmem:[%s730_s0] ss:$16 sps:$4 sm:$0xff]   ;;  %v561_v33 = vld [vmem:[%s730_s0 + $0x4] ss:$16 sps:$4 sm:$0xff]   ;;  %v562_v34 = vld [vmem:[%s730_s0 + $0x8] ss:$16 sps:$4 sm:$0xff]  }
   0xe   :  { %505 = vmatprep.subr.bf16.mxu1 %v540_v13  ;;  %v564_v35 = vld [vmem:[%s730_s0 + $0xc] ss:$16 sps:$4 sm:$0xff]   ;;  %353 = vmatprep.mubr.bf16.mxu0 %v561_v33  ;;  %v419_v10 = vld [vmem:[%s732_s3 + $0x10] sm:$0xff] }
   0xf   :  { %401 = vmatprep.mubr.bf16.mxu1 %v564_v35  ;;  %v418_v59 = vld [vmem:[%s732_s3 + $0x8] sm:$0xff] }
  0x10   :  { %478 = vmatpush3.bf16.msra.mxu0 %v541_v14 }
  0x11   :  { %506 = vmatpush3.bf16.msra.mxu1 %v542_v15  ;;  %479 = vmatprep.subr.bf16.mxu0 %v543_v16 }
  0x12   :  { %507 = vmatprep.subr.bf16.mxu1 %v544_v17 }
  0x14   :  { %480 = vmatpush3.bf16.msra.mxu0 %v545_v18 }
  0x15   :  { %508 = vmatpush3.bf16.msra.mxu1 %v546_v19  ;;  %481 = vmatprep.subr.bf16.mxu0 %v547_v20 }
  0x16   :  { %509 = vmatprep.subr.bf16.mxu1 %v548_v21 }
  0x18   :  { %482 = vmatpush3.bf16.msra.mxu0 %v549_v22 }
  0x19   :  { %510 = vmatpush3.bf16.msra.mxu1 %v550_v23  ;;  %483 = vmatprep.subr.bf16.mxu0 %v551_v24 }
  0x1a   :  { %511 = vmatprep.subr.bf16.mxu1 %v552_v25 }
  0x1c   :  { %484 = vmatpush3.bf16.msra.mxu0 %v553_v26 }
  0x1d   :  { %512 = vmatpush3.bf16.msra.mxu1 %v554_v27  ;;  %485 = vmatprep.subr.bf16.mxu0 %v555_v28 }
  0x1e   :  { %513 = vmatprep.subr.bf16.mxu1 %v556_v29 }
  0x20   :  { %486 = vmatpush3.bf16.msra.mxu0 %v557_v30 }
  0x21   :  { %514 = vmatpush3.bf16.msra.mxu1 %v558_v31 }
  0x23   :  { %354 = vmatmul.mubr.bf16.vlgmr.msra.gmra.mrb[0].mxu0 %v559_v32 }
  0x24   :  { %402 = vmatmul.mubr.bf16.vlgmr.msra.gmra.mrb[0].mxu1 %v562_v34  ;;  %361 = vmatprep.mubr.bf16.mxu0 %v436_v37 }
  0x25   :  { %409 = vmatprep.mubr.bf16.mxu1 %v438_v39 }
  0x2b   :  { %362 = vmatmul.mubr.bf16.gmra.mrb[4].mxu0 %v435_v40 }
  0x2c   :  { %410 = vmatmul.mubr.bf16.gmra.mrb[4].mxu1 %v437_v41 }
  0xf6   :  { %v487_v42 = vpop.f32.mrb[0].mxu0 }
  0xf7   :  { %v515_v43 = vpop.f32.mrb[0].mxu1  ;;  %v488_v45 = vpop.f32.mrb[1].mxu0 }
  0xf8   :  { %v489_v46 = vadd.f32 %v488_v45, %v487_v42  ;;  %v516_v47 = vpop.f32.mrb[1].mxu1  ;;  %v490_v48 = vpop.f32.mrb[2].mxu0 }
  0xf9   :  { %v517_v49 = vadd.f32 %v516_v47, %v515_v43  ;;  %v518_v50 = vpop.f32.mrb[2].mxu1  ;;  %v491_v51 = vpop.f32.mrb[3].mxu0 }
  0xfa   :  { %v356_v52 = vadd.f32 %v489_v46, %v430_v44  ;;  %v492_v53 = vadd.f32 %v491_v51, %v490_v48  ;;  %v519_v54 = vpop.f32.mrb[3].mxu1 }
  0xfb   :  { %v520_v56 = vadd.f32 %v519_v54, %v518_v50 }
  0xfc   :  { %v404_v57 = vadd.f32 %v517_v49, %v356_v52  ;;  %v359_v58 = vadd.f32 %v492_v53, %v430_v44 }
  0xfe   :  { %v420_v60 = vadd.f32 %v417_v55, %v404_v57  ;;  %v407_v61 = vadd.f32 %v520_v56, %v359_v58  ;;  %v493_v62 = vpop.f32.mrb[4].mxu0 }
  0xff   :  { %v521_v63 = vpop.f32.mrb[4].mxu1  ;;  %v494_v0 = vpop.f32.mrb[5].mxu0 }
 0x100   :  { %423 = vst [vmem:[%s733_s4] sm:$0xff] %v420_v60  ;;  %v421_v1 = vadd.f32 %v418_v59, %v407_v61  ;;  %v495_v2 = vadd.f32 %v494_v0, %v493_v62  ;;  %v522_v3 = vpop.f32.mrb[5].mxu1  ;;  %v496_v4 = vpop.f32.mrb[6].mxu0 }
 0x101   :  { %v523_v5 = vadd.f32 %v522_v3, %v521_v63  ;;  %v524_v6 = vpop.f32.mrb[6].mxu1  ;;  %v497_v7 = vpop.f32.mrb[7].mxu0 }
 0x102   :  { %424 = vst [vmem:[%s733_s4 + $0x8] sm:$0xff] %v421_v1  ;;  %v364_v8 = vadd.f32 %v495_v2, %v430_v44  ;;  %v525_v9 = vpop.f32.mrb[7].mxu1 }
 0x104   :  { %v412_v11 = vadd.f32 %v523_v5, %v364_v8 }
 0x106   :  { %v422_v12 = vadd.f32 %v419_v10, %v412_v11 }
 0x108   :  { %425 = vst [vmem:[%s733_s4 + $0x10] sm:$0xff] %v422_v12 }

// kernel: _lambda_.15
= control target key start
LH: loop header
LB: loop body
LE: loop exit
PB: predicated region body
PF: predicated region fallthrough
CT: control target
= control target key end

     0   :  { %v919_v41 = vmov 0   ;;  %s1300_s0 = inlined_call_operand.vmem [shape: f32[24,128], index: 0, kind: input, shape index: {}]   ;;  %s1301_s1 = inlined_call_operand.vmem [shape: bf16[128,512], index: 1, kind: input, shape index: {}]   ;;  %s1302_s3 = inlined_call_operand.vmem [shape: f32[1,128], index: 3, kind: input, shape index: {}]   ;;  %s1303_s4 = inlined_call_operand.vmem [shape: f32[1,128], index: 4, kind: input, shape index: {}]   ;;  %s1304_s2 = inlined_call_operand.vmem [shape: f32[1,512], index: 2, kind: input, shape index: {}]   ;;  %s1305_s5 = inlined_call_operand.vmem [shape: bf16[24,512], index: 5, kind: output, shape index: {}]  }
   0x1   :  { %v21_v0 = vld [vmem:[%s1300_s0] sm:$0xff]  ;;  %v23_v1 = vld [vmem:[%s1300_s0 + $0x10] sm:$0xff]  ;;  %v22_v2 = vld [vmem:[%s1300_s0 + $0x8] sm:$0xff]  ;;  %326 = vmatprep.mubr.bf16.mxu0 %v919_v41  ;;  %377 = vmatprep.mubr.bf16.mxu1 %v919_v41 }
   0x2   :  { %24 = vadd.xlane.f32.xlu0 %v21_v0  ;;  %28 = vadd.xlane.f32.xlu1 %v23_v1  ;;  %v817_v3 = vld [vmem:[%s1301_s1 + $0x4] ss:$16 sps:$4 sm:$0xff]   ;;  %v819_v4 = vld [vmem:[%s1301_s1 + $0xc] ss:$16 sps:$4 sm:$0xff]   ;;  %v821_v5 = vld [vmem:[%s1301_s1] ss:$16 sps:$4 sm:$0xff]  }
   0x3   :  { %294 = vmatprep.subr.bf16.mxu0 %v817_v3  ;;  %v822_v6 = vld [vmem:[%s1301_s1 + $0x8] ss:$16 sps:$4 sm:$0xff]   ;;  %345 = vmatprep.subr.bf16.mxu1 %v819_v4  ;;  %v823_v7 = vld [vmem:[%s1301_s1 + $0x24] ss:$16 sps:$4 sm:$0xff]   ;;  %v825_v8 = vld [vmem:[%s1301_s1 + $0x2c] ss:$16 sps:$4 sm:$0xff]  }
   0x4   :  { %295 = vmatpush1.bf16.msra.mxu0 %v821_v5  ;;  %346 = vmatpush1.bf16.msra.mxu1 %v822_v6  ;;  %v827_v21 = vld [vmem:[%s1301_s1 + $0x20] ss:$16 sps:$4 sm:$0xff]   ;;  %v828_v22 = vld [vmem:[%s1301_s1 + $0x28] ss:$16 sps:$4 sm:$0xff]   ;;  %v829_v23 = vld [vmem:[%s1301_s1 + $0x44] ss:$16 sps:$4 sm:$0xff]  }
   0x5   :  { %296 = vmatprep.subr.bf16.mxu0 %v823_v7  ;;  %347 = vmatprep.subr.bf16.mxu1 %v825_v8  ;;  %v831_v24 = vld [vmem:[%s1301_s1 + $0x4c] ss:$16 sps:$4 sm:$0xff]   ;;  %v833_v25 = vld [vmem:[%s1301_s1 + $0x40] ss:$16 sps:$4 sm:$0xff]   ;;  %v834_v26 = vld [vmem:[%s1301_s1 + $0x48] ss:$16 sps:$4 sm:$0xff]  }
   0x6   :  { %26 = vadd.xlane.f32.xlu0 %v22_v2  ;;  %v835_v27 = vld [vmem:[%s1301_s1 + $0x64] ss:$16 sps:$4 sm:$0xff]   ;;  %v837_v28 = vld [vmem:[%s1301_s1 + $0x6c] ss:$16 sps:$4 sm:$0xff]   ;;  %v839_v29 = vld [vmem:[%s1301_s1 + $0x60] ss:$16 sps:$4 sm:$0xff]  }
   0x7   :  { %v840_v30 = vld [vmem:[%s1301_s1 + $0x68] ss:$16 sps:$4 sm:$0xff]   ;;  %v841_v31 = vld [vmem:[%s1301_s1 + $0x84] ss:$16 sps:$4 sm:$0xff]   ;;  %v843_v32 = vld [vmem:[%s1301_s1 + $0x8c] ss:$16 sps:$4 sm:$0xff]  }
   0x8   :  { %297 = vmatpush1.bf16.msra.mxu0 %v827_v21  ;;  %348 = vmatpush1.bf16.msra.mxu1 %v828_v22  ;;  %v845_v33 = vld [vmem:[%s1301_s1 + $0x80] ss:$16 sps:$4 sm:$0xff]   ;;  %v846_v34 = vld [vmem:[%s1301_s1 + $0x88] ss:$16 sps:$4 sm:$0xff]   ;;  %v847_v35 = vld [vmem:[%s1301_s1 + $0xa4] ss:$16 sps:$4 sm:$0xff]  }
   0x9   :  { %298 = vmatprep.subr.bf16.mxu0 %v829_v23  ;;  %349 = vmatprep.subr.bf16.mxu1 %v831_v24  ;;  %v849_v36 = vld [vmem:[%s1301_s1 + $0xac] ss:$16 sps:$4 sm:$0xff]   ;;  %v851_v37 = vld [vmem:[%s1301_s1 + $0xa0] ss:$16 sps:$4 sm:$0xff]   ;;  %v852_v38 = vld [vmem:[%s1301_s1 + $0xa8] ss:$16 sps:$4 sm:$0xff]  }
   0xa   :  { %v853_v39 = vld [vmem:[%s1301_s1 + $0xc4] ss:$16 sps:$4 sm:$0xff]   ;;  %v855_v40 = vld [vmem:[%s1301_s1 + $0xcc] ss:$16 sps:$4 sm:$0xff]   ;;  %v857_v42 = vld [vmem:[%s1301_s1 + $0xc0] ss:$16 sps:$4 sm:$0xff]  }
   0xb   :  { %v858_v43 = vld [vmem:[%s1301_s1 + $0xc8] ss:$16 sps:$4 sm:$0xff]   ;;  %v859_v44 = vld [vmem:[%s1301_s1 + $0xe4] ss:$16 sps:$4 sm:$0xff]   ;;  %v861_v45 = vld [vmem:[%s1301_s1 + $0xec] ss:$16 sps:$4 sm:$0xff]  }
   0xc   :  { %299 = vmatpush1.bf16.msra.mxu0 %v833_v25  ;;  %350 = vmatpush1.bf16.msra.mxu1 %v834_v26  ;;  %v863_v46 = vld [vmem:[%s1301_s1 + $0xe0] ss:$16 sps:$4 sm:$0xff]   ;;  %v864_v47 = vld [vmem:[%s1301_s1 + $0xe8] ss:$16 sps:$4 sm:$0xff]  }
   0xd   :  { %300 = vmatprep.subr.bf16.mxu0 %v835_v27  ;;  %351 = vmatprep.subr.bf16.mxu1 %v837_v28  ;;  %v770_v59 = vld [vmem:[%s1302_s3] ss:$0 sm:$0xff] }
  0x10   :  { %301 = vmatpush1.bf16.msra.mxu0 %v839_v29  ;;  %352 = vmatpush1.bf16.msra.mxu1 %v840_v30 }
  0x11   :  { %302 = vmatprep.subr.bf16.mxu0 %v841_v31  ;;  %353 = vmatprep.subr.bf16.mxu1 %v843_v32 }
  0x14   :  { %303 = vmatpush1.bf16.msra.mxu0 %v845_v33  ;;  %354 = vmatpush1.bf16.msra.mxu1 %v846_v34 }
  0x15   :  { %304 = vmatprep.subr.bf16.mxu0 %v847_v35  ;;  %355 = vmatprep.subr.bf16.mxu1 %v849_v36 }
  0x18   :  { %305 = vmatpush1.bf16.msra.mxu0 %v851_v37  ;;  %356 = vmatpush1.bf16.msra.mxu1 %v852_v38 }
  0x19   :  { %306 = vmatprep.subr.bf16.mxu0 %v853_v39  ;;  %357 = vmatprep.subr.bf16.mxu1 %v855_v40 }
  0x1c   :  { %307 = vmatpush1.bf16.msra.mxu0 %v857_v42  ;;  %358 = vmatpush1.bf16.msra.mxu1 %v858_v43 }
  0x1d   :  { %308 = vmatprep.subr.bf16.mxu0 %v859_v44  ;;  %359 = vmatprep.subr.bf16.mxu1 %v861_v45 }
  0x20   :  { %309 = vmatpush1.bf16.msra.mxu0 %v863_v46  ;;  %360 = vmatpush1.bf16.msra.mxu1 %v864_v47 }
  0x8f   :  { %v25_v9 = vpop.xlane.xlu0 %24  ;;  %v29_v10 = vpop.xlane.xlu1 %28 }
  0x90   :  { %v31_v11 = vmul.f32 0.0078125, %v25_v9  ;;  %v33_v12 = vmul.f32 0.0078125, %v29_v10  ;;  %v114_v9 = vlaneseq }
  0x92   :  { %v977_v13 = vsub.f32 %v21_v0, %v31_v11  ;;  %v979_v14 = vsub.f32 %v23_v1, %v33_v12  ;;  %v771_v0 = vld [vmem:[%s1303_s4] ss:$0 sm:$0xff]  ;;  %v115_v10 = vshrl.u32 %v114_v9, 7 }
  0x93   :  { %v27_v15 = vpop.xlane.xlu0 %26 }
  0x94   :  { %v32_v16 = vmul.f32 0.0078125, %v27_v15  ;;  %v37_v17 = vmul.f32 %v977_v13, %v977_v13  ;;  %v39_v19 = vmul.f32 %v979_v14, %v979_v14  ;;  %v116_v11 = vsub.s32 0, %v115_v10 }
  0x95   :  { %v124_v12 = vsub.s32 2, %v115_v10  ;;  %v128_v15 = vsub.s32 3, %v115_v10 }
  0x96   :  { %v983_v18 = vsub.f32 %v22_v2, %v32_v16  ;;  %40 = vadd.xlane.f32.xlu1 %v37_v17 }
  0x98   :  { %v38_v20 = vmul.f32 %v983_v18, %v983_v18 }
  0x9a   :  { %44 = vadd.xlane.f32.xlu1 %v39_v19  ;;  %42 = vadd.xlane.f32.xlu0 %v38_v20 }
 0x123   :  { %v41_v48 = vpop.xlane.xlu1 %40 }
 0x124   :  { %v46_v49 = vmul.f32 0.0078125, %v41_v48 }
 0x126   :  { %v49_v50 = vadd.f32 1e-06, %v46_v49 }
 0x127   :  { %v45_v51 = vpop.xlane.xlu1 %44  ;;  %v43_v52 = vpop.xlane.xlu0 %42 }
 0x128   :  { %865 = vrsqrt.f32 %v49_v50  ;;  %v48_v53 = vmul.f32 0.0078125, %v45_v51  ;;  %v47_v54 = vmul.f32 0.0078125, %v43_v52 }
 0x12a   :  { %v51_v55 = vadd.f32 1e-06, %v48_v53  ;;  %v50_v56 = vadd.f32 1e-06, %v47_v54 }
 0x12c   :  { %867 = vrsqrt.f32 %v51_v55 }
 0x12d   :  { %869 = vrsqrt.f32 %v50_v56 }
 0x132   :  { %v866_v57 = vpop.eup %865 }
 0x133   :  { %v55_v58 = vmul.f32 %v866_v57, %v977_v13  ;;  %v112_v13 = vld [vmem:[%s1304_s2] sm:$0xf] }
 0x134   :  { %v1079_v16 = vrot.slane %v112_v13, %v116_v11  ;;  %v1081_v17 = vrot.slane %v112_v13, %v124_v12  ;;  %v1085_v19 = vrot.slane %v112_v13, %v128_v15 }
 0x135   :  { %v65_v63 = vmul.f32 %v770_v59, %v55_v58 }
 0x136   :  { %v868_v60 = vpop.eup %867 }
 0x137   :  { %v870_v61 = vpop.eup %869  ;;  %v57_v2 = vmul.f32 %v868_v60, %v979_v14  ;;  %v75_v3 = vadd.f32 %v771_v0, %v65_v63  ;;  %v120_v14 = vsub.s32 1, %v115_v10 }
 0x138   :  { %v56_v62 = vmul.f32 %v870_v61, %v983_v18 }
 0x139   :  { %v67_v6 = vmul.f32 %v770_v59, %v57_v2  ;;  %v1083_v18 = vrot.slane %v112_v13, %v120_v14 }
 0x13a   :  { %v66_v1 = vmul.f32 %v770_v59, %v56_v62 }
 0x13b   :  { %v77_v7 = vadd.f32 %v771_v0, %v67_v6 }
 0x13c   :  { %v76_v4 = vadd.f32 %v771_v0, %v66_v1 }
 0x13d   :  { %v79_v8 = vpack.c.bf16 %v77_v7, %v77_v7 }
 0x13e   :  { %v78_v5 = vpack.c.bf16 %v76_v4, %v75_v3 }
 0x140   :  { %327 = vmatmul.mubr.bf16.vlgmr.msra.gmra.mrb[0].mxu0 %v78_v5  ;;  %378 = vmatmul.mubr.bf16.vlgmr.msra.gmra.mrb[0].mxu1 %v78_v5 }
 0x141   :  { %336 = vmatprep.mubr.bf16.mxu0 %v919_v41  ;;  %387 = vmatprep.mubr.bf16.mxu1 %v919_v41 }
 0x148   :  { %337 = vmatmul.mubr.bf16.gmra.mrb[4].mxu0 %v79_v8  ;;  %388 = vmatmul.mubr.bf16.gmra.mrb[4].mxu1 %v79_v8 }
 0x213   :  { %v328_v20 = vpop.f32.mrb[0].mxu0  ;;  %v379_v21 = vpop.f32.mrb[0].mxu1 }
 0x214   :  { %v329_v22 = vadd.f32 %v328_v20, %v1079_v16  ;;  %v380_v23 = vadd.f32 %v379_v21, %v1081_v17  ;;  %v330_v24 = vpop.f32.mrb[1].mxu0  ;;  %v381_v25 = vpop.f32.mrb[1].mxu1 }
 0x215   :  { %v331_v26 = vadd.f32 %v330_v24, %v1083_v18  ;;  %v382_v27 = vadd.f32 %v381_v25, %v1085_v19  ;;  %v332_v28 = vpop.f32.mrb[2].mxu0  ;;  %v383_v29 = vpop.f32.mrb[2].mxu1 }
 0x216   :  { %v1091_v30 = vmul.f32 0.70710677, %v329_v22  ;;  %v1093_v31 = vmul.f32 0.70710677, %v380_v23  ;;  %v334_v44 = vpop.f32.mrb[3].mxu0  ;;  %v385_v45 = vpop.f32.mrb[3].mxu1  ;;  %v1108_v50 = vadd.f32 %v332_v28, %v1079_v16  ;;  %v1115_v54 = vadd.f32 %v383_v29, %v1081_v17 }
 0x217   :  { %v1095_v32 = vmul.f32 0.70710677, %v331_v26  ;;  %v1097_v33 = vmul.f32 0.70710677, %v382_v27  ;;  %v1121_v60 = vadd.f32 %v334_v44, %v1083_v18  ;;  %v1123_v63 = vmul.f32 0.5, %v329_v22 }
 0x218   :  { %v420_v34 = vand.u32 2147483647, %v1091_v30  ;;  %v422_v35 = vand.u32 2147483647, %v1093_v31  ;;  %v1118_v59 = vmul.f32 0.70710677, %v1108_v50  ;;  %v1132_v4 = vadd.f32 %v385_v45, %v1085_v19 }
 0x219   :  { %v421_v36 = vand.u32 2147483647, %v1095_v32  ;;  %v423_v37 = vand.u32 2147483647, %v1097_v33  ;;  %v1125_v0 = vmul.f32 0.5, %v380_v23  ;;  %v1138_v9 = vmul.f32 0.5, %v331_v26 }
 0x21a   :  { %v432_v38 = vmul.f32 0.3275911, %v420_v34  ;;  %v434_v39 = vmul.f32 0.3275911, %v422_v35  ;;  %v588_v48 = vsub.f32 0.0, %v420_v34  ;;  %v590_v53 = vsub.f32 0.0, %v422_v35 }
 0x21b   :  { %v433_v40 = vmul.f32 0.3275911, %v421_v36  ;;  %v435_v43 = vmul.f32 0.3275911, %v423_v37  ;;  %v1103_v46 = vpop.f32.mrb[4].mxu0  ;;  %v1105_v47 = vpop.f32.mrb[4].mxu1 }
 0x21c   :  { %v444_v41 = vadd.f32 1.0, %v432_v38  ;;  %v446_v42 = vadd.f32 1.0, %v434_v39  ;;  %v1110_v51 = vpop.f32.mrb[5].mxu0  ;;  %v1112_v52 = vpop.f32.mrb[5].mxu1  ;;  %v589_v57 = vsub.f32 0.0, %v421_v36  ;;  %v600_v2 = vmul.f32 %v588_v48, %v420_v34 }
 0x21d   :  { %v445_v49 = vadd.f32 1.0, %v433_v40  ;;  %v342_v55 = vpop.f32.mrb[6].mxu0  ;;  %v393_v56 = vpop.f32.mrb[6].mxu1  ;;  %v447_v58 = vadd.f32 1.0, %v435_v43  ;;  %v1128_v1 = vmul.f32 0.70710677, %v1115_v54  ;;  %v602_v5 = vmul.f32 %v590_v53, %v422_v35 }
 0x21e   :  { %871 = vrcp.f32 %v444_v41  ;;  %v343_v61 = vpop.f32.mrb[7].mxu0  ;;  %v394_v62 = vpop.f32.mrb[7].mxu1  ;;  %v424_v3 = vand.u32 2147483647, %v1118_v59  ;;  %v591_v6 = vsub.f32 0.0, %v423_v37  ;;  %v601_v10 = vmul.f32 %v589_v57, %v421_v36 }
 0x21f   :  { %873 = vrcp.f32 %v446_v42  ;;  %v426_v7 = vand.u32 2147483647, %v1128_v1  ;;  %v1136_v8 = vmul.f32 0.70710677, %v1121_v60  ;;  %v1140_v12 = vmul.f32 0.5, %v382_v27 }
 0x220   :  { %875 = vrcp.f32 %v445_v49  ;;  %v436_v11 = vmul.f32 0.3275911, %v424_v3  ;;  %v592_v13 = vsub.f32 0.0, %v424_v3  ;;  %v612_v20 = vmul.f32 1.442695, %v600_v2 }
 0x221   :  { %877 = vrcp.f32 %v447_v58  ;;  %v438_v14 = vmul.f32 0.3275911, %v426_v7  ;;  %v425_v15 = vand.u32 2147483647, %v1136_v8  ;;  %v594_v22 = vsub.f32 0.0, %v426_v7 }
 0x222   :  { %v448_v21 = vadd.f32 1.0, %v436_v11  ;;  %v1144_v23 = vmul.f32 0.70710677, %v1132_v4  ;;  %v616_v24 = vmul.f32 1.442695, %v602_v5  ;;  %v603_v25 = vmul.f32 %v591_v6, %v423_v37 }
 0x223   :  { %v450_v28 = vadd.f32 1.0, %v438_v14  ;;  %v437_v26 = vmul.f32 0.3275911, %v425_v15  ;;  %v614_v34 = vmul.f32 1.442695, %v601_v10  ;;  %v593_v27 = vsub.f32 0.0, %v425_v15 }
 0x224   :  { %879 = vrcp.f32 %v448_v21  ;;  %v427_v35 = vand.u32 2147483647, %v1144_v23  ;;  %v604_v39 = vmul.f32 %v592_v13, %v424_v3  ;;  %v606_v37 = vmul.f32 %v594_v22, %v426_v7 }
 0x225   :  { %881 = vrcp.f32 %v450_v28  ;;  %v449_v40 = vadd.f32 1.0, %v437_v26  ;;  %v618_v44 = vmul.f32 1.442695, %v603_v25  ;;  %v1155_v45 = vadd.f32 %v1103_v46, %v1079_v16 }
 0x226   :  { %883 = vpow2.f32 %v612_v20  ;;  %v439_v42 = vmul.f32 0.3275911, %v427_v35  ;;  %v605_v53 = vmul.f32 %v593_v27, %v425_v15  ;;  %v620_v58 = vmul.f32 1.442695, %v604_v39 }
 0x227   :  { %885 = vpow2.f32 %v616_v24  ;;  %v624_v2 = vmul.f32 1.442695, %v606_v37  ;;  %v595_v3 = vsub.f32 0.0, %v427_v35  ;;  %v1165_v16 = vmul.f32 0.70710677, %v1155_v45 }
 0x228   :  { %v1146_v29 = vpop.eup %871  ;;  %887 = vrcp.f32 %v449_v40  ;;  %v451_v55 = vadd.f32 1.0, %v439_v42  ;;  %v622_v10 = vmul.f32 1.442695, %v605_v53  ;;  %vm660_vm0 = vcmp.ge.f32.partialorder %v1091_v30, 0.0 }
 0x229   :  { %v1149_v36 = vpop.eup %873  ;;  %v480_v38 = vmul.f32 1.0614054, %v1146_v29  ;;  %889 = vpow2.f32 %v614_v34  ;;  %v1169_v11 = vand.u32 2147483647, %v1165_v16  ;;  %v607_v22 = vmul.f32 %v595_v3, %v427_v35 }
 0x22a   :  { %v482_v41 = vmul.f32 1.0614054, %v1149_v36  ;;  %v1157_v48 = vpop.eup %875  ;;  %891 = vrcp.f32 %v451_v55  ;;  %vm662_vm1 = vcmp.ge.f32.partialorder %v1093_v31, 0.0  ;;  %vm661_vm2 = vcmp.ge.f32.partialorder %v1095_v32, 0.0 }
 0x22b   :  { %v492_v43 = vadd.f32 -1.4531521, %v480_v38  ;;  %v481_v57 = vmul.f32 1.0614054, %v1157_v48  ;;  %v1161_v61 = vpop.eup %877  ;;  %893 = vpow2.f32 %v618_v44  ;;  %v440_v24 = vmul.f32 0.3275911, %v1169_v11 }
 0x22c   :  { %v494_v49 = vadd.f32 -1.4531521, %v482_v41  ;;  %v483_v6 = vmul.f32 1.0614054, %v1161_v61  ;;  %895 = vpow2.f32 %v620_v58  ;;  %vm663_vm3 = vcmp.ge.f32.partialorder %v1097_v33, 0.0 }
 0x22d   :  { %v504_v56 = vmul.f32 %v1146_v29, %v492_v43  ;;  %v493_v5 = vadd.f32 -1.4531521, %v481_v57  ;;  %897 = vpow2.f32 %v624_v2  ;;  %v452_v41 = vadd.f32 1.0, %v440_v24 }
 0x22e   :  { %v506_v62 = vmul.f32 %v1149_v36, %v494_v49  ;;  %v495_v15 = vadd.f32 -1.4531521, %v483_v6  ;;  %v1173_v20 = vpop.eup %879  ;;  %899 = vpow2.f32 %v622_v10  ;;  %v1191_v57 = vadd.f32 %v1105_v47, %v1081_v17 }
 0x22f   :  { %v516_v46 = vadd.f32 1.4214138, %v504_v56  ;;  %v505_v14 = vmul.f32 %v1157_v48, %v493_v5  ;;  %v1177_v25 = vpop.eup %881  ;;  %v484_v27 = vmul.f32 1.0614054, %v1173_v20  ;;  %v1187_v56 = vmul.f32 1.442695, %v607_v22 }
 0x230   :  { %v518_v7 = vadd.f32 1.4214138, %v506_v62  ;;  %v507_v34 = vmul.f32 %v1161_v61, %v495_v15  ;;  %v884_v38 = vpop.eup %883  ;;  %v486_v40 = vmul.f32 1.0614054, %v1177_v25  ;;  %901 = vrcp.f32 %v452_v41 }
 0x231   :  { %v528_v13 = vmul.f32 %v1146_v29, %v516_v46  ;;  %v517_v26 = vadd.f32 1.4214138, %v505_v14  ;;  %v886_v37 = vpop.eup %885  ;;  %v496_v44 = vadd.f32 -1.4531521, %v484_v27  ;;  %903 = vpow2.f32 %v1187_v56 }
 0x232   :  { %v530_v21 = vmul.f32 %v1149_v36, %v518_v7  ;;  %v519_v43 = vadd.f32 1.4214138, %v507_v34  ;;  %v1184_v49 = vpop.eup %887  ;;  %v498_v55 = vadd.f32 -1.4531521, %v486_v40  ;;  %vm664_vm4 = vcmp.ge.f32.partialorder %v1118_v59, 0.0 }
 0x233   :  { %v540_v28 = vadd.f32 -0.28449672, %v528_v13  ;;  %v529_v35 = vmul.f32 %v1157_v48, %v517_v26  ;;  %v890_v58 = vpop.eup %889  ;;  %v508_v46 = vmul.f32 %v1173_v20, %v496_v44  ;;  %v485_v7 = vmul.f32 1.0614054, %v1184_v49 }
 0x234   :  { %v542_v39 = vadd.f32 -0.28449672, %v530_v21  ;;  %v531_v3 = vmul.f32 %v1161_v61, %v519_v43  ;;  %v510_v6 = vmul.f32 %v1177_v25, %v498_v55  ;;  %v1198_v10 = vpop.eup %891  ;;  %vm666_vm5 = vcmp.ge.f32.partialorder %v1128_v1, 0.0 }
 0x235   :  { %v552_v42 = vmul.f32 %v1146_v29, %v540_v28  ;;  %v541_v2 = vadd.f32 -0.28449672, %v529_v35  ;;  %v520_v14 = vadd.f32 1.4214138, %v508_v46  ;;  %v894_v15 = vpop.eup %893  ;;  %v497_v24 = vadd.f32 -1.4531521, %v485_v7 }
 0x236   :  { %v554_v53 = vmul.f32 %v1149_v36, %v542_v39  ;;  %v543_v13 = vadd.f32 -0.28449672, %v531_v3  ;;  %v522_v22 = vadd.f32 1.4214138, %v510_v6  ;;  %v487_v28 = vmul.f32 1.0614054, %v1198_v10  ;;  %v896_v26 = vpop.eup %895 }
 0x237   :  { %v564_v62 = vadd.f32 0.2548296, %v552_v42  ;;  %v553_v47 = vmul.f32 %v1157_v48, %v541_v2  ;;  %v898_v40 = vpop.eup %897  ;;  %v509_v35 = vmul.f32 %v1184_v49, %v497_v24  ;;  %vm665_vm6 = vcmp.ge.f32.partialorder %v1136_v8, 0.0 }
 0x238   :  { %v566_v5 = vadd.f32 0.2548296, %v554_v53  ;;  %v555_v39 = vmul.f32 %v1161_v61, %v543_v13  ;;  %v534_v42 = vmul.f32 %v1177_v25, %v522_v22  ;;  %v596_v1 = vsub.f32 0.0, %v1169_v11 }
 0x239   :  { %v576_v17 = vmul.f32 %v1146_v29, %v564_v62  ;;  %v565_v27 = vadd.f32 0.2548296, %v553_v47  ;;  %v532_v29 = vmul.f32 %v1173_v20, %v520_v14  ;;  %v521_v3 = vadd.f32 1.4214138, %v509_v35 }
 0x23a   :  { %v578_v21 = vmul.f32 %v1149_v36, %v566_v5  ;;  %v499_v36 = vadd.f32 -1.4531521, %v487_v28  ;;  %v567_v53 = vadd.f32 0.2548296, %v555_v39  ;;  %v546_v2 = vadd.f32 -0.28449672, %v534_v42 }
 0x23b   :  { %v636_v34 = vmul.f32 %v884_v38, %v576_v17  ;;  %v577_v44 = vmul.f32 %v1157_v48, %v565_v27  ;;  %v544_v55 = vadd.f32 -0.28449672, %v532_v29  ;;  %v900_v38 = vpop.eup %899  ;;  %v533_v48 = vmul.f32 %v1184_v49, %v521_v3 }
 0x23c   :  { %v638_v41 = vmul.f32 %v886_v37, %v578_v21  ;;  %v511_v37 = vmul.f32 %v1198_v10, %v499_v36  ;;  %v579_v6 = vmul.f32 %v1161_v61, %v567_v53  ;;  %v558_v47 = vmul.f32 %v1177_v25, %v546_v2  ;;  %v1219_v28 = vpop.eup %901 }
 0x23d   :  { %v648_v43 = vsub.f32 1.0, %v636_v34  ;;  %v637_v5 = vmul.f32 %v890_v58, %v577_v44  ;;  %v556_v7 = vmul.f32 %v1173_v20, %v544_v55  ;;  %v545_v27 = vadd.f32 -0.28449672, %v533_v48 }
 0x23e   :  { %v650_v62 = vsub.f32 1.0, %v638_v41  ;;  %v523_v13 = vadd.f32 1.4214138, %v511_v37  ;;  %v639_v22 = vmul.f32 %v894_v15, %v579_v6  ;;  %v570_v58 = vadd.f32 0.2548296, %v558_v47 }
 0x23f   :  { %v672_v46 = vsub.f32 0.0, %v648_v43  ;;  %v649_v21 = vsub.f32 1.0, %v637_v5  ;;  %v568_v24 = vadd.f32 0.2548296, %v556_v7  ;;  %v557_v30 = vmul.f32 %v1184_v49, %v545_v27 }
 0x240   :  { %v674_v17 = vsub.f32 0.0, %v650_v62  ;;  %v651_v41 = vsub.f32 1.0, %v639_v22  ;;  %v582_v35 = vmul.f32 %v1177_v25, %v570_v58  ;;  %v535_v15 = vmul.f32 %v1198_v10, %v523_v13  ;;  %v904_v22 = vpop.eup %903 }
 0x241   :  { %v684_v14 = vsel %vm660_vm0, %v648_v43, %v672_v46  ;;  %v673_v29 = vsub.f32 0.0, %v649_v21  ;;  %v580_v42 = vmul.f32 %v1173_v20, %v568_v24  ;;  %v488_v37 = vmul.f32 1.0614054, %v1219_v28 }
 0x242   :  { %v696_v34 = vadd.f32 1.0, %v684_v14  ;;  %v686_v61 = vsel %vm662_vm1, %v650_v62, %v674_v17  ;;  %v675_v43 = vsub.f32 0.0, %v651_v41  ;;  %v642_v55 = vmul.f32 %v898_v40, %v582_v35 }
 0x243   :  { %v698_v39 = vadd.f32 1.0, %v686_v61  ;;  %v685_v31 = vsel %vm661_vm2, %v649_v21, %v673_v29  ;;  %v640_v44 = vmul.f32 %v896_v26, %v580_v42  ;;  %v569_v62 = vadd.f32 0.2548296, %v557_v30 }
 0x244   :  { %v708_v36 = vmul.f32 %v696_v34, %v1123_v63  ;;  %v697_v53 = vadd.f32 1.0, %v685_v31  ;;  %v547_v2 = vadd.f32 -0.28449672, %v535_v15  ;;  %v687_v25 = vsel %vm663_vm3, %v651_v41, %v675_v43 }
 0x245   :  { %v710_v20 = vmul.f32 %v698_v39, %v1125_v0  ;;  %v652_v3 = vsub.f32 1.0, %v640_v44  ;;  %v699_v63 = vadd.f32 1.0, %v687_v25  ;;  %v654_v46 = vsub.f32 1.0, %v642_v55 }
 0x246   :  { %v709_v56 = vmul.f32 %v697_v53, %v1138_v9  ;;  %v581_v32 = vmul.f32 %v1184_v49, %v569_v62  ;;  %v559_v26 = vmul.f32 %v1198_v10, %v547_v2  ;;  %v500_v40 = vadd.f32 -1.4531521, %v488_v37 }
 0x247   :  { %v676_v5 = vsub.f32 0.0, %v652_v3  ;;  %v1239_v6 = vmul.f32 0.70710677, %v1191_v57  ;;  %v711_v33 = vmul.f32 %v699_v63, %v1140_v12  ;;  %v678_v47 = vsub.f32 0.0, %v654_v46 }
 0x248   :  { %v810_v0 = vpack.c.bf16 %v709_v56, %v708_v36  ;;  %v641_v7 = vmul.f32 %v900_v38, %v581_v32  ;;  %v571_v9 = vadd.f32 0.2548296, %v559_v26  ;;  %v512_v14 = vmul.f32 %v1219_v28, %v500_v40 }
 0x249   :  { %v688_v17 = vsel %vm664_vm4, %v652_v3, %v676_v5  ;;  %v430_v48 = vand.u32 2147483647, %v1239_v6  ;;  %v811_v49 = vpack.c.bf16 %v711_v33, %v710_v20  ;;  %v1250_v21 = vadd.f32 %v1110_v51, %v1083_v18 }
 0x24a   :  { %760 = vst [vmem:[%s1305_s5] sm:$0xff] %v810_v0  ;;  %v653_v13 = vsub.f32 1.0, %v641_v7  ;;  %v700_v12 = vadd.f32 1.0, %v688_v17  ;;  %v583_v59 = vmul.f32 %v1198_v10, %v571_v9  ;;  %v400_v24 = vmul.f32 0.5, %v1108_v50 }
 0x24b   :  { %v442_v38 = vmul.f32 0.3275911, %v430_v48  ;;  %761 = vst [vmem:[%s1305_s5 + $0x8] sm:$0xff] %v811_v49  ;;  %v690_v61 = vsel %vm666_vm5, %v654_v46, %v678_v47  ;;  %v401_v51 = vmul.f32 0.5, %v1121_v60  ;;  %v524_v10 = vadd.f32 1.4214138, %v512_v14 }
 0x24c   :  { %v677_v34 = vsub.f32 0.0, %v653_v13  ;;  %v643_v58 = vmul.f32 %v904_v22, %v583_v59  ;;  %v1261_v39 = vmul.f32 0.70710677, %v1250_v21  ;;  %v712_v29 = vmul.f32 %v700_v12, %v400_v24 }
 0x24d   :  { %v454_v18 = vadd.f32 1.0, %v442_v38  ;;  %v702_v50 = vadd.f32 1.0, %v690_v61  ;;  %v1267_v8 = vadd.f32 %v1112_v52, %v1085_v19  ;;  %v402_v15 = vmul.f32 0.5, %v1115_v54 }
 0x24e   :  { %v689_v27 = vsel %vm665_vm6, %v653_v13, %v677_v34  ;;  %v655_v42 = vsub.f32 1.0, %v643_v58  ;;  %v429_v35 = vand.u32 2147483647, %v1261_v39  ;;  %v403_v36 = vmul.f32 0.5, %v1132_v4 }
 0x24f   :  { %v701_v41 = vadd.f32 1.0, %v689_v27  ;;  %905 = vrcp.f32 %v454_v18  ;;  %vm667_vm7 = vcmp.ge.f32.partialorder %v1144_v23, 0.0  ;;  %v536_v53 = vmul.f32 %v1219_v28, %v524_v10 }
 0x250   :  { %v679_v60 = vsub.f32 0.0, %v655_v42  ;;  %v441_v31 = vmul.f32 0.3275911, %v429_v35  ;;  %v1274_v55 = vmul.f32 0.70710677, %v1267_v8  ;;  %v714_v62 = vmul.f32 %v702_v50, %v402_v15 }
 0x251   :  { %v713_v30 = vmul.f32 %v701_v41, %v401_v51  ;;  %v608_v19 = vmul.f32 %v596_v1, %v1169_v11  ;;  %v598_v54 = vsub.f32 0.0, %v430_v48  ;;  %v548_v20 = vadd.f32 -0.28449672, %v536_v53 }
 0x252   :  { %v691_v44 = vsel %vm667_vm7, %v655_v42, %v679_v60  ;;  %v453_v52 = vadd.f32 1.0, %v441_v31  ;;  %v431_v4 = vand.u32 2147483647, %v1274_v55  ;;  %v597_v26 = vsub.f32 0.0, %v429_v35 }
 0x253   :  { %v812_v43 = vpack.c.bf16 %v713_v30, %v712_v29  ;;  %v703_v2 = vadd.f32 1.0, %v691_v44  ;;  %v628_v37 = vmul.f32 1.442695, %v608_v19  ;;  %v610_v63 = vmul.f32 %v598_v54, %v430_v48 }
 0x254   :  { %907 = vrcp.f32 %v453_v52  ;;  %v443_v25 = vmul.f32 0.3275911, %v431_v4  ;;  %v560_v32 = vmul.f32 %v1219_v28, %v548_v20  ;;  %v609_v47 = vmul.f32 %v597_v26, %v429_v35 }
 0x255   :  { %762 = vst [vmem:[%s1305_s5 + $0x10] sm:$0xff] %v812_v43  ;;  %v715_v23 = vmul.f32 %v703_v2, %v403_v36  ;;  %v632_v40 = vmul.f32 1.442695, %v610_v63  ;;  %v599_v48 = vsub.f32 0.0, %v431_v4  ;;  %vm668_vm8 = vcmp.ge.f32.partialorder %v1165_v16, 0.0 }
 0x256   :  { %v455_v46 = vadd.f32 1.0, %v443_v25  ;;  %v572_v33 = vadd.f32 0.2548296, %v560_v32  ;;  %v630_v59 = vmul.f32 1.442695, %v609_v47  ;;  %vm670_vm9 = vcmp.ge.f32.partialorder %v1239_v6, 0.0 }
 0x257   :  { %v813_v3 = vpack.c.bf16 %v715_v23, %v714_v62  ;;  %v611_v24 = vmul.f32 %v599_v48, %v431_v4  ;;  %v404_v63 = vmul.f32 0.5, %v1155_v45  ;;  %vm669_vm10 = vcmp.ge.f32.partialorder %v1261_v39, 0.0 }
 0x258   :  { %909 = vrcp.f32 %v455_v46  ;;  %v584_v13 = vmul.f32 %v1219_v28, %v572_v33  ;;  %vm671_vm11 = vcmp.ge.f32.partialorder %v1274_v55, 0.0 }
 0x259   :  { %v906_v56 = vpop.eup %905  ;;  %763 = vst [vmem:[%s1305_s5 + $0x18] sm:$0xff] %v813_v3  ;;  %911 = vpow2.f32 %v628_v37  ;;  %v634_v41 = vmul.f32 1.442695, %v611_v24 }
 0x25a   :  { %v490_v11 = vmul.f32 1.0614054, %v906_v56  ;;  %913 = vpow2.f32 %v632_v40 }
 0x25b   :  { %915 = vpow2.f32 %v630_v59 }
 0x25c   :  { %v502_v5 = vadd.f32 -1.4531521, %v490_v11  ;;  %917 = vpow2.f32 %v634_v41 }
 0x25e   :  { %v514_v0 = vmul.f32 %v906_v56, %v502_v5  ;;  %v908_v7 = vpop.eup %907  ;;  %v405_v5 = vmul.f32 0.5, %v1250_v21 }
 0x25f   :  { %v489_v9 = vmul.f32 1.0614054, %v908_v7 }
 0x260   :  { %v526_v17 = vadd.f32 1.4214138, %v514_v0 }
 0x261   :  { %v501_v14 = vadd.f32 -1.4531521, %v489_v9  ;;  %v407_v9 = vmul.f32 0.5, %v1267_v8 }
 0x262   :  { %v538_v49 = vmul.f32 %v906_v56, %v526_v17  ;;  %v910_v38 = vpop.eup %909  ;;  %v406_v17 = vmul.f32 0.5, %v1191_v57 }
 0x263   :  { %v513_v22 = vmul.f32 %v908_v7, %v501_v14  ;;  %v912_v34 = vpop.eup %911  ;;  %v491_v58 = vmul.f32 1.0614054, %v910_v38 }
 0x264   :  { %v550_v12 = vadd.f32 -0.28449672, %v538_v49  ;;  %v644_v18 = vmul.f32 %v912_v34, %v584_v13  ;;  %v914_v1 = vpop.eup %913 }
 0x265   :  { %v525_v51 = vadd.f32 1.4214138, %v513_v22  ;;  %v503_v10 = vadd.f32 -1.4531521, %v491_v58  ;;  %v916_v2 = vpop.eup %915 }
 0x266   :  { %v562_v61 = vmul.f32 %v906_v56, %v550_v12  ;;  %v656_v28 = vsub.f32 1.0, %v644_v18  ;;  %v918_v37 = vpop.eup %917 }
 0x267   :  { %v537_v29 = vmul.f32 %v908_v7, %v525_v51  ;;  %v515_v50 = vmul.f32 %v910_v38, %v503_v10 }
 0x268   :  { %v574_v27 = vadd.f32 0.2548296, %v562_v61  ;;  %v680_v31 = vsub.f32 0.0, %v656_v28 }
 0x269   :  { %v549_v35 = vadd.f32 -0.28449672, %v537_v29  ;;  %v527_v60 = vadd.f32 1.4214138, %v515_v50 }
 0x26a   :  { %v586_v42 = vmul.f32 %v906_v56, %v574_v27  ;;  %v692_v52 = vsel %vm668_vm8, %v656_v28, %v680_v31 }
 0x26b   :  { %v561_v15 = vmul.f32 %v908_v7, %v549_v35  ;;  %v539_v36 = vmul.f32 %v910_v38, %v527_v60  ;;  %v704_v25 = vadd.f32 1.0, %v692_v52 }
 0x26c   :  { %v646_v30 = vmul.f32 %v914_v1, %v586_v42 }
 0x26d   :  { %v573_v43 = vadd.f32 0.2548296, %v561_v15  ;;  %v551_v53 = vadd.f32 -0.28449672, %v539_v36  ;;  %v716_v16 = vmul.f32 %v704_v25, %v404_v63 }
 0x26e   :  { %v658_v44 = vsub.f32 1.0, %v646_v30 }
 0x26f   :  { %v585_v62 = vmul.f32 %v908_v7, %v573_v43  ;;  %v563_v19 = vmul.f32 %v910_v38, %v551_v53 }
 0x270   :  { %v682_v4 = vsub.f32 0.0, %v658_v44 }
 0x271   :  { %v645_v54 = vmul.f32 %v916_v2, %v585_v62  ;;  %v575_v23 = vadd.f32 0.2548296, %v563_v19 }
 0x272   :  { %v694_v46 = vsel %vm670_vm9, %v658_v44, %v682_v4 }
 0x273   :  { %v657_v20 = vsub.f32 1.0, %v645_v54  ;;  %v587_v3 = vmul.f32 %v910_v38, %v575_v23  ;;  %v706_v0 = vadd.f32 1.0, %v694_v46 }
 0x275   :  { %v681_v56 = vsub.f32 0.0, %v657_v20  ;;  %v647_v11 = vmul.f32 %v918_v37, %v587_v3  ;;  %v718_v45 = vmul.f32 %v706_v0, %v406_v17 }
 0x277   :  { %v693_v32 = vsel %vm669_vm10, %v657_v20, %v681_v56  ;;  %v659_v40 = vsub.f32 1.0, %v647_v11 }
 0x278   :  { %v705_v26 = vadd.f32 1.0, %v693_v32 }
 0x279   :  { %v683_v7 = vsub.f32 0.0, %v659_v40 }
 0x27a   :  { %v717_v33 = vmul.f32 %v705_v26, %v405_v5 }
 0x27b   :  { %v695_v47 = vsel %vm671_vm11, %v659_v40, %v683_v7 }
 0x27c   :  { %v814_v6 = vpack.c.bf16 %v717_v33, %v716_v16  ;;  %v707_v39 = vadd.f32 1.0, %v695_v47 }
 0x27e   :  { %764 = vst [vmem:[%s1305_s5 + $0x20] sm:$0xff] %v814_v6  ;;  %v719_v21 = vmul.f32 %v707_v39, %v407_v9 }
 0x280   :  { %v815_v48 = vpack.c.bf16 %v719_v21, %v718_v45 }
 0x282   :  { %765 = vst [vmem:[%s1305_s5 + $0x28] sm:$0xff] %v815_v48 }

</bundles_post_ra>
